<compile_context>
chip_gen: v5e
topology: v5e:2x2
jax: 0.10.0
libtpu: 0.0.40
codegen_flags: <defaults>
</compile_context>

<pallas_src>
import functools

import jax
import jax.numpy as jnp
import numpy as np
from jax import lax
from jax.experimental import pallas as pl
from jax.experimental.pallas import tpu as pltpu


# ---------------------------------------------------------------------------
# tiling helpers
# ---------------------------------------------------------------------------
def _round_up(x, m):
    return ((x + m - 1) // m) * m


def _tile_and_pad(dim, target):
    """Lane-aligned tile (multiple of 128, <= target) and padded extent (multiple of
    the tile).  Small dims are padded up to 128 instead of falling back to unaligned
    whole-array blocks."""
    assert target % 128 == 0
    tile = min(target, _round_up(dim, 128))
    return tile, _round_up(dim, tile)


def _p_tile(P, target=512):
    """Tile for the flattened-mode axis of specmix: lane-aligned divisor of P when
    P is 128-aligned and large, else the full (small) dim."""
    if P % 128 == 0 and P > target:
        t = (target // 128) * 128
        while P % t:
            t -= 128
        return t
    return P


# ---------------------------------------------------------------------------
# Pallas kernel 1: shared VFT matmul (forward and inverse use the same kernel)
#   out[b, l, o] += lhs[b, l, k-tile] @ v[b, k-tile, o-tile]      (f32 accumulate)
#   lhs is VMEM-resident per batch (constant index map); V is the streamed,
#   HBM-bound operand; contraction is on rhs dim 0 (no transpose of the V tile).
# ---------------------------------------------------------------------------
def _vft_kernel(lhs_ref, v_ref, o_ref, *, tk):
    k = pl.program_id(2)

    @pl.when(k == 0)
    def _init():
        o_ref[...] = jnp.zeros_like(o_ref)

    off = pl.multiple_of(k * tk, tk)               # tk is a multiple of 128
    lhs = lhs_ref[0, :, pl.ds(off, tk)]            # (L, tk) slice of the resident block
    o_ref[0] += jnp.dot(lhs, v_ref[0], preferred_element_type=jnp.float32)


def _vft_matmul(lhs, v, *, t_out, t_k, v_buffers=2):
    """lhs: (B, L, Ktot);  v: (B, Ktot, Nout)  ->  (B, L, Nout) float32.
    Requires Ktot % t_k == 0 and Nout % t_out == 0 (guaranteed by the padding)."""
    B, L, Ktot = lhs.shape
    Nout = v.shape[2]
    assert Ktot % t_k == 0 and Nout % t_out == 0
    grid = (B, Nout // t_out, Ktot // t_k)

    lhs_spec = pl.BlockSpec((1, L, Ktot), lambda b, o, k: (b, 0, 0))       # resident/batch
    v_kwargs = {} if v_buffers == 2 else {"pipeline_mode": pl.Buffered(v_buffers)}
    v_spec = pl.BlockSpec((1, t_k, t_out), lambda b, o, k: (b, k, o), **v_kwargs)
    o_spec = pl.BlockSpec((1, L, t_out), lambda b, o, k: (b, 0, o))        # acc across k

    # explicit VMEM budget: resident lhs + multi-buffered V tile + out tile (+headroom)
    bpe = jnp.dtype(lhs.dtype).itemsize
    est = (2 * L * Ktot * bpe + (v_buffers + 1) * t_k * t_out * bpe + 2 * L * t_out * 4)
    vmem_limit = int(min(max(2 * est, 32 * 1024 * 1024), 48 * 1024 * 1024))

    return pl.pallas_call(
        functools.partial(_vft_kernel, tk=t_k),
        out_shape=jax.ShapeDtypeStruct((B, L, Nout), jnp.float32),
        grid=grid,
        in_specs=[lhs_spec, v_spec],
        out_specs=o_spec,
        compiler_params=pltpu.CompilerParams(
            dimension_semantics=("parallel", "parallel", "arbitrary"),
            vmem_limit_bytes=vmem_limit),
    )(lhs, v)


# ---------------------------------------------------------------------------
# Pallas kernel 2: fused complex channel mixing for BOTH mode corners, tiled on P
#   out[g, b, o, p] = sum_i x[g, i, b, p] * w[g, i, o, p]    (g = corner/weight)
#   bf16 operands (upcast in-kernel), f32 accumulation, output committed per chunk.
# ---------------------------------------------------------------------------
def _specmix_kernel(xr_ref, xi_ref, wr_ref, wi_ref, or_ref, oi_ref, *, ci, chunk):
    out_shape = or_ref.shape[1:]                    # (B, Co, tP)

    def chunk_sum(lo, hi):
        acc_r = jnp.zeros(out_shape, jnp.float32)
        acc_i = jnp.zeros(out_shape, jnp.float32)
        for i in range(lo, hi):                     # static unroll; ref slice is free
            xr = xr_ref[0, i].astype(jnp.float32)[:, None, :]   # (B, 1, tP)
            xi = xi_ref[0, i].astype(jnp.float32)[:, None, :]
            wr = wr_ref[0, i].astype(jnp.float32)[None, :, :]   # (1, Co, tP)
            wi = wi_ref[0, i].astype(jnp.float32)[None, :, :]
            acc_r = acc_r + xr * wr - xi * wi
            acc_i = acc_i + xr * wi + xi * wr
        return acc_r, acc_i

    r, im = chunk_sum(0, min(chunk, ci))
    or_ref[0] = r
    oi_ref[0] = im
    for lo in range(chunk, ci, chunk):              # one VMEM commit per chunk
        r, im = chunk_sum(lo, min(lo + chunk, ci))
        or_ref[0] += r
        oi_ref[0] += im


def specmix_corners(xr, xi, wr, wi, *, tp=512, chunk=8):
    """xr/xi: (2, Ci, B, P); wr/wi: (2, Ci, Co, P) -> (re, im) of (2, B, Co, P), f32."""
    G, Ci, B, P = xr.shape
    Co = wr.shape[2]
    tP = _p_tile(P, tp)
    grid = (G, P // tP)
    x_spec = pl.BlockSpec((1, Ci, B, tP), lambda g, p: (g, 0, 0, p))
    w_spec = pl.BlockSpec((1, Ci, Co, tP), lambda g, p: (g, 0, 0, p))
    o_spec = pl.BlockSpec((1, B, Co, tP), lambda g, p: (g, 0, 0, p))
    return pl.pallas_call(
        functools.partial(_specmix_kernel, ci=Ci, chunk=chunk),
        out_shape=(jax.ShapeDtypeStruct((G, B, Co, P), jnp.float32),
                   jax.ShapeDtypeStruct((G, B, Co, P), jnp.float32)),
        grid=grid,
        in_specs=[x_spec, x_spec, w_spec, w_spec],
        out_specs=(o_spec, o_spec),
        compiler_params=pltpu.CompilerParams(
            dimension_semantics=("parallel", "parallel"),
            vmem_limit_bytes=32 * 1024 * 1024),
    )(xr, xi, wr, wi)


# ---------------------------------------------------------------------------
# VFT operands (the `transformer` of the PyTorch forward), built as REAL arrays:
#   V_fwd[b, m, n] = exp(-i (kx_m * x_n + ky_m * y_n));  mode ordering matches the
#   module's reshape to (2*m1, 2*m1-1).  V_inv = conj(V_fwd)^T is folded into the
#   real arithmetic (never built).
# ---------------------------------------------------------------------------
def _mode_wavenumbers(m1):
    kx = jnp.concatenate([jnp.arange(m1), jnp.arange(-m1, 0)]).astype(jnp.float32)        # (2m1,)
    ky = jnp.concatenate([jnp.arange(m1), jnp.arange(-(m1 - 1), 0)]).astype(jnp.float32)  # (2m1-1,)
    KX = jnp.repeat(kx, 2 * m1 - 1)   # kx slow
    KY = jnp.tile(ky, 2 * m1)         # ky fast
    return KX, KY                     # (M,), M = 2*m1*(2*m1-1)


def make_vft_operands(xpos, ypos, m1, *, m_pad, n_pad, dtype=jnp.bfloat16):
    """Returns (v_fw, v_inv) without materializing a complex64 matrix:
      v_fw  (B, n_pad, 2*m_pad): columns [cos | -sin]  (forward: contraction over n)
      v_inv (B, 2*m_pad, n_pad): rows    [cos ; -sin]  (inverse: contraction over m)
    Mode padding is zero; point padding is harmless (it multiplies zero-padded x in
    the forward and the padded output columns are sliced away after the inverse)."""
    B, N = xpos.shape
    KX, KY = _mode_wavenumbers(m1)
    M = KX.shape[0]
    xp = jnp.pad(xpos, ((0, 0), (0, n_pad - N)))
    yp = jnp.pad(ypos, ((0, 0), (0, n_pad - N)))

    # forward layout: phase (B, n_pad, M)
    ph_f = xp[:, :, None] * KX[None, None, :] + yp[:, :, None] * KY[None, None, :]
    cos_f = jnp.pad(jnp.cos(ph_f), ((0, 0), (0, 0), (0, m_pad - M)))
    sin_f = jnp.pad(-jnp.sin(ph_f), ((0, 0), (0, 0), (0, m_pad - M)))
    v_fw = jnp.concatenate([cos_f, sin_f], axis=-1).astype(dtype)

    # inverse layout: phase (B, M, n_pad)
    ph_i = KX[None, :, None] * xp[:, None, :] + KY[None, :, None] * yp[:, None, :]
    cos_i = jnp.pad(jnp.cos(ph_i), ((0, 0), (0, m_pad - M), (0, 0)))
    sin_i = jnp.pad(-jnp.sin(ph_i), ((0, 0), (0, m_pad - M), (0, 0)))
    v_inv = jnp.concatenate([cos_i, sin_i], axis=1).astype(dtype)
    return v_fw, v_inv


# ---------------------------------------------------------------------------
# SpectralConv2d_dse.forward
# ---------------------------------------------------------------------------
def spectral_conv2d_dse_forward(x, w1, w2, xpos, ypos, modes1, out_channels,
                                compute_dtype=jnp.bfloat16,
                                mode_tile=1024, point_tile=1024, v_buffers=2):
    B, C, N = x.shape
    m1 = modes1
    Co = out_channels
    if C != Co:
        raise ValueError("SpectralConv2d_dse reshape requires in_channels == out_channels")
    M = 2 * m1 * (2 * m1 - 1)
    P = m1 * m1

    t_m, m_pad = _tile_and_pad(M, mode_tile)     # tile / padding of the mode axis
    t_n, n_pad = _tile_and_pad(N, point_tile)    # tile / padding of the points axis

    v_fw, v_inv = make_vft_operands(xpos, ypos, m1, m_pad=m_pad, n_pad=n_pad,
                                    dtype=compute_dtype)

    # --- forward VFT of the real input: one dot per tile, output [Re | Im] stacked
    xb = jnp.pad(x, ((0, 0), (0, 0), (0, n_pad - N))).astype(compute_dtype)
    xft = _vft_matmul(xb, v_fw, t_out=t_m, t_k=t_n, v_buffers=v_buffers)   # (B,C,2*m_pad) f32
    xft_r = xft[..., :M].reshape(B, Co, 2 * m1, 2 * m1 - 1)
    xft_i = xft[..., m_pad:m_pad + M].reshape(B, Co, 2 * m1, 2 * m1 - 1)

    # --- fused channel mixing of the two mode corners (bf16 operands, f32 accumulate)
    def corners(a):                                          # -> (2, Ci, B, P)
        c = jnp.stack([a[:, :, :m1, :m1], a[:, :, m1:, :m1]])
        return jnp.transpose(c, (0, 2, 1, 3, 4)).reshape(2, C, B, P).astype(compute_dtype)

    wr = jnp.stack([jnp.real(w1), jnp.real(w2)]).reshape(2, C, Co, P).astype(compute_dtype)
    wi = jnp.stack([jnp.imag(w1), jnp.imag(w2)]).reshape(2, C, Co, P).astype(compute_dtype)
    mix_r, mix_i = specmix_corners(corners(xft_r), corners(xft_i), wr, wi)  # (2,B,Co,P) f32

    # out_ft (B, Co, 2*m1, m1) flattened: rows [0:m1] <- corner 0, rows [m1:2m1] <- corner 1
    def to_flat(a):
        return jnp.transpose(a.reshape(2, B, Co, m1, m1),
                             (1, 2, 0, 3, 4)).reshape(B, Co, 2 * m1 * m1)

    flat_r, flat_i = to_flat(mix_r), to_flat(mix_i)

    # conjugate-symmetry reconstruction (mirrors the torch flip over (-1, -2); axis -2
    # is the channel axis of the (B, Co, 2*m1*m1) view, exactly as in the original module)
    tail_r = jnp.flip(flat_r[..., 2 * m1:], axis=(-1, -2))
    tail_i = -jnp.flip(flat_i[..., 2 * m1:], axis=(-1, -2))
    spec_r = jnp.concatenate([flat_r, tail_r], axis=-1)      # (B, Co, M)
    spec_i = jnp.concatenate([flat_i, tail_i], axis=-1)

    # fold the final "* 2 / num_pts" into the small spectrum, stack [Re | Im] on the
    # padded mode axis so the inverse is one dot per tile (V_inv folded into real math)
    s = 2.0 / N
    spec_st = jnp.concatenate(
        [jnp.pad(spec_r * s, ((0, 0), (0, 0), (0, m_pad - M))),
         jnp.pad(spec_i * s, ((0, 0), (0, 0), (0, m_pad - M)))],
        axis=-1).astype(compute_dtype)                        # (B, Co, 2*m_pad)

    # --- inverse VFT, real part only
    y = _vft_matmul(spec_st, v_inv, t_out=t_n, t_k=t_m, v_buffers=v_buffers)  # (B,Co,n_pad)
    return y[..., :N]


# ---------------------------------------------------------------------------
# Pure-JAX reference mirroring the torch module.  With compute_dtype=bfloat16 it
# applies the same operand roundings as the Pallas path (tight comparison); with
# float32 it is the full-precision module semantics.
# ---------------------------------------------------------------------------
def reference_forward(x, w1, w2, xpos, ypos, m1, Co, compute_dtype=jnp.float32):
    B, C, N = x.shape
    hp = lax.Precision.HIGHEST
    f32 = jnp.float32
    KX, KY = _mode_wavenumbers(m1)
    phase = KX[None, :, None] * xpos[:, None, :] + KY[None, :, None] * ypos[:, None, :]
    vr = jnp.cos(phase).astype(compute_dtype).astype(f32)       # Re(V_fwd)
    vi = (-jnp.sin(phase)).astype(compute_dtype).astype(f32)    # Im(V_fwd)
    xb = x.astype(compute_dtype).astype(f32)

    xft_r = jnp.einsum('bcn,bmn->bcm', xb, vr, precision=hp)
    xft_i = jnp.einsum('bcn,bmn->bcm', xb, vi, precision=hp)
    x_ft = (xft_r + 1j * xft_i).reshape(B, Co, 2 * m1, 2 * m1 - 1)

    def cast_c(z):
        return (jnp.real(z).astype(compute_dtype).astype(f32)
                + 1j * jnp.imag(z).astype(compute_dtype).astype(f32))

    out_ft = jnp.zeros((B, Co, 2 * m1, m1), jnp.complex64)
    out_ft = out_ft.at[:, :, :m1, :m1].set(
        jnp.einsum('bixy,ioxy->boxy', cast_c(x_ft[:, :, :m1, :m1]), cast_c(w1), precision=hp))
    out_ft = out_ft.at[:, :, -m1:, :m1].set(
        jnp.einsum('bixy,ioxy->boxy', cast_c(x_ft[:, :, -m1:, :m1]), cast_c(w2), precision=hp))

    spec = out_ft.reshape(B, Co, 2 * m1 * m1)
    spec2 = jnp.conj(jnp.flip(spec[..., 2 * m1:], axis=(-1, -2)))
    spec = jnp.concatenate([spec, spec2], axis=-1) * (2.0 / N)

    sr = jnp.real(spec).astype(compute_dtype).astype(f32)
    si = jnp.imag(spec).astype(compute_dtype).astype(f32)
    # Re[ spec . conj(V_fwd) ]  with vr = cos, vi = -sin  =>  sr*vr + si*vi
    return (jnp.einsum('bcm,bmn->bcn', sr, vr, precision=hp)
            + jnp.einsum('bcm,bmn->bcn', si, vi, precision=hp))


if __name__ == "__main__":
    B, Cin, Cout, m1, N = 2, 4, 4, 4, 16     # the module's reshape requires Cin == Cout
    key = jax.random.PRNGKey(0)
    k1, k2, k3, k4, k5, k6, k7 = jax.random.split(key, 7)

    # Deterministic parameter init mirroring torch.rand(..., dtype=cfloat) * scale
    scale = 1.0 / (Cin * Cout)
    w1 = (scale * (jax.random.uniform(k1, (Cin, Cout, m1, m1))
                   + 1j * jax.random.uniform(k2, (Cin, Cout, m1, m1)))).astype(jnp.complex64)
    w2 = (scale * (jax.random.uniform(k3, (Cin, Cout, m1, m1))
                   + 1j * jax.random.uniform(k4, (Cin, Cout, m1, m1)))).astype(jnp.complex64)

    # Input signal and non-equispaced point positions for the VFT transformer
    x = jax.random.normal(k5, (B, Cin, N), jnp.float32)
    xpos = jax.random.uniform(k6, (B, N), minval=0.0, maxval=2.0 * np.pi)
    ypos = jax.random.uniform(k7, (B, N), minval=0.0, maxval=2.0 * np.pi)

    fwd = jax.jit(spectral_conv2d_dse_forward, static_argnums=(5, 6))
    out = jax.block_until_ready(fwd(x, w1, w2, xpos, ypos, m1, Cout))

    assert out.shape == (B, Cout, N) and out.dtype == jnp.float32

    # Tight check against a reference that applies the same bf16 operand rounding.
    ref_bf16 = jax.block_until_ready(
        reference_forward(x, w1, w2, xpos, ypos, m1, Cout, compute_dtype=jnp.bfloat16))
    np.testing.assert_allclose(np.asarray(out), np.asarray(ref_bf16), rtol=5e-3, atol=5e-3)

    # Sanity check against full-f32 module semantics (bf16 MXU operands bound the error).
    ref_f32 = jax.block_until_ready(
        reference_forward(x, w1, w2, xpos, ypos, m1, Cout, compute_dtype=jnp.float32))
    np.testing.assert_allclose(np.asarray(out), np.asarray(ref_f32), rtol=1e-1, atol=1e-1)

    print("KERNEL_OK")
</pallas_src>

<mosaic_0001>
module attributes {stable_mosaic.version = 11 : i64} {
  func.func @_vft_kernel(%arg0: i32, %arg1: i32, %arg2: i32, %arg3: memref<1x4x128xbf16, #tpu.memory_space<vmem>>, %arg4: memref<1x128x128xbf16, #tpu.memory_space<vmem>>, %arg5: memref<1x4x128xf32, #tpu.memory_space<vmem>>) attributes {dimension_semantics = [#tpu.dimension_semantics<parallel>, #tpu.dimension_semantics<parallel>, #tpu.dimension_semantics<arbitrary>], iteration_bounds = array<i64: 2, 2, 1>, scalar_prefetch = 0 : i64, scratch_operands = 0 : i64, tpu.core_type = #tpu.core_type<tc>, window_params = [{transform_indices = @transform_0, window_bounds = array<i64: 1, 4, 128>}, {transform_indices = @transform_1, window_bounds = array<i64: 1, 128, 128>}, {transform_indices = @transform_2, window_bounds = array<i64: 1, 4, 128>}]} {
    %c0_i32 = arith.constant 0 : i32
    %0 = arith.cmpi eq, %arg2, %c0_i32 : i32
    %1 = arith.extui %0 : i1 to i32
    %c0_i32_0 = arith.constant 0 : i32
    %2 = arith.cmpi ne, %1, %c0_i32_0 : i32
    scf.if %2 {
      %cst_11 = arith.constant 0.000000e+00 : f32
      %17 = vector.broadcast %cst_11 : f32 to vector<1x4x128xf32>
      %c0_12 = arith.constant 0 : index
      %c0_13 = arith.constant 0 : index
      %c0_14 = arith.constant 0 : index
      %18 = vector.load %arg5[%c0_12, %c0_13, %c0_14] : memref<1x4x128xf32, #tpu.memory_space<vmem>>, vector<1x4x128xf32>
      tpu.vector_store %arg5[%c0_12, %c0_13, %c0_14], %17 {strides = array<i32>} : memref<1x4x128xf32, #tpu.memory_space<vmem>>, vector<1x4x128xf32>,
    } else {
    }
    %c128_i32 = arith.constant 128 : i32
    %3 = arith.muli %arg2, %c128_i32 : i32
    %4 = tpu.assume_multiple %3, 128 : i32
    %c0 = arith.constant 0 : index
    %c0_1 = arith.constant 0 : index
    %5 = arith.index_cast %4 : i32 to index
    %6 = vector.load %arg3[%c0, %c0_1, %5] : memref<1x4x128xbf16, #tpu.memory_space<vmem>>, vector<1x4x128xbf16>
    %7 = vector.shape_cast %6 : vector<1x4x128xbf16> to vector<4x128xbf16>
    %c0_2 = arith.constant 0 : index
    %c0_3 = arith.constant 0 : index
    %c0_4 = arith.constant 0 : index
    %8 = vector.load %arg5[%c0_2, %c0_3, %c0_4] : memref<1x4x128xf32, #tpu.memory_space<vmem>>, vector<1x4x128xf32>
    %9 = vector.shape_cast %8 : vector<1x4x128xf32> to vector<4x128xf32>
    %c0_5 = arith.constant 0 : index
    %c0_6 = arith.constant 0 : index
    %c0_7 = arith.constant 0 : index
    %10 = vector.load %arg4[%c0_5, %c0_6, %c0_7] : memref<1x128x128xbf16, #tpu.memory_space<vmem>>, vector<1x128x128xbf16>
    %11 = vector.shape_cast %10 : vector<1x128x128xbf16> to vector<128x128xbf16>
    %cst = arith.constant dense<0.000000e+00> : vector<4x128xf32>
    %12 = tpu.matmul %7, %11, %cst {dimension_numbers = #tpu.dot_dimension_numbers<[1], [0], [0], [1], [0, 0, 1, 1], [], []>} : vector<4x128xbf16>, vector<128x128xbf16>, vector<4x128xf32> -> vector<4x128xf32>
    %13 = arith.addf %9, %12 : vector<4x128xf32>
    %c0_8 = arith.constant 0 : index
    %c0_9 = arith.constant 0 : index
    %c0_10 = arith.constant 0 : index
    %14 = vector.load %arg5[%c0_8, %c0_9, %c0_10] : memref<1x4x128xf32, #tpu.memory_space<vmem>>, vector<1x4x128xf32>
    %15 = vector.shape_cast %14 : vector<1x4x128xf32> to vector<4x128xf32>
    %16 = vector.shape_cast %13 : vector<4x128xf32> to vector<1x4x128xf32>
    tpu.vector_store %arg5[%c0_8, %c0_9, %c0_10], %16 {strides = array<i32>} : memref<1x4x128xf32, #tpu.memory_space<vmem>>, vector<1x4x128xf32>,
    return
  }
  func.func @transform_0(%arg0: i32, %arg1: i32, %arg2: i32) -> (i32, i32, i32) {
    %c0_i32 = arith.constant 0 : i32
    %c0_i32_0 = arith.constant 0 : i32
    %c0_i32_1 = arith.constant 0 : i32
    return %arg0, %c0_i32, %c0_i32_0 : i32, i32, i32
  }
  func.func @transform_1(%arg0: i32, %arg1: i32, %arg2: i32) -> (i32, i32, i32) {
    %c0_i32 = arith.constant 0 : i32
    return %arg0, %arg2, %arg1 : i32, i32, i32
  }
  func.func @transform_2(%arg0: i32, %arg1: i32, %arg2: i32) -> (i32, i32, i32) {
    %c0_i32 = arith.constant 0 : i32
    %c0_i32_0 = arith.constant 0 : i32
    return %arg0, %c0_i32, %arg1 : i32, i32, i32
  }
}

module attributes {stable_mosaic.version = 11 : i64} {
  func.func @_specmix_kernel(%arg0: i32, %arg1: i32, %arg2: memref<1x4x2x16xbf16, #tpu.memory_space<vmem>>, %arg3: memref<1x4x2x16xbf16, #tpu.memory_space<vmem>>, %arg4: memref<1x4x4x16xbf16, #tpu.memory_space<vmem>>, %arg5: memref<1x4x4x16xbf16, #tpu.memory_space<vmem>>, %arg6: memref<1x2x4x16xf32, #tpu.memory_space<vmem>>, %arg7: memref<1x2x4x16xf32, #tpu.memory_space<vmem>>) attributes {dimension_semantics = [#tpu.dimension_semantics<parallel>, #tpu.dimension_semantics<parallel>], iteration_bounds = array<i64: 2, 1>, scalar_prefetch = 0 : i64, scratch_operands = 0 : i64, tpu.core_type = #tpu.core_type<tc>, window_params = [{transform_indices = @transform_0, window_bounds = array<i64: 1, 4, 2, 16>}, {transform_indices = @transform_1, window_bounds = array<i64: 1, 4, 2, 16>}, {transform_indices = @transform_2, window_bounds = array<i64: 1, 4, 4, 16>}, {transform_indices = @transform_3, window_bounds = array<i64: 1, 4, 4, 16>}, {transform_indices = @transform_4, window_bounds = array<i64: 1, 2, 4, 16>}, {transform_indices = @transform_5, window_bounds = array<i64: 1, 2, 4, 16>}]} {
    %cst = arith.constant 0.000000e+00 : f32
    %0 = vector.broadcast %cst : f32 to vector<2x4x16xf32>
    %cst_0 = arith.constant 0.000000e+00 : f32
    %1 = vector.broadcast %cst_0 : f32 to vector<2x4x16xf32>
    %c0 = arith.constant 0 : index
    %c0_1 = arith.constant 0 : index
    %c0_2 = arith.constant 0 : index
    %c0_3 = arith.constant 0 : index
    %2 = vector.load %arg2[%c0, %c0_1, %c0_2, %c0_3] : memref<1x4x2x16xbf16, #tpu.memory_space<vmem>>, vector<1x1x2x16xbf16>
    %3 = vector.shape_cast %2 : vector<1x1x2x16xbf16> to vector<2x16xbf16>
    %4 = arith.extf %3 : vector<2x16xbf16> to vector<2x16xf32>
    %5 = vector.shape_cast %4 : vector<2x16xf32> to vector<2x1x16xf32>
    %c0_4 = arith.constant 0 : index
    %c0_5 = arith.constant 0 : index
    %c0_6 = arith.constant 0 : index
    %c0_7 = arith.constant 0 : index
    %6 = vector.load %arg3[%c0_4, %c0_5, %c0_6, %c0_7] : memref<1x4x2x16xbf16, #tpu.memory_space<vmem>>, vector<1x1x2x16xbf16>
    %7 = vector.shape_cast %6 : vector<1x1x2x16xbf16> to vector<2x16xbf16>
    %8 = arith.extf %7 : vector<2x16xbf16> to vector<2x16xf32>
    %9 = vector.shape_cast %8 : vector<2x16xf32> to vector<2x1x16xf32>
    %c0_8 = arith.constant 0 : index
    %c0_9 = arith.constant 0 : index
    %c0_10 = arith.constant 0 : index
    %c0_11 = arith.constant 0 : index
    %10 = vector.load %arg4[%c0_8, %c0_9, %c0_10, %c0_11] : memref<1x4x4x16xbf16, #tpu.memory_space<vmem>>, vector<1x1x4x16xbf16>
    %11 = vector.shape_cast %10 : vector<1x1x4x16xbf16> to vector<4x16xbf16>
    %12 = arith.extf %11 : vector<4x16xbf16> to vector<4x16xf32>
    %13 = vector.shape_cast %12 : vector<4x16xf32> to vector<1x4x16xf32>
    %c0_12 = arith.constant 0 : index
    %c0_13 = arith.constant 0 : index
    %c0_14 = arith.constant 0 : index
    %c0_15 = arith.constant 0 : index
    %14 = vector.load %arg5[%c0_12, %c0_13, %c0_14, %c0_15] : memref<1x4x4x16xbf16, #tpu.memory_space<vmem>>, vector<1x1x4x16xbf16>
    %15 = vector.shape_cast %14 : vector<1x1x4x16xbf16> to vector<4x16xbf16>
    %16 = arith.extf %15 : vector<4x16xbf16> to vector<4x16xf32>
    %17 = vector.shape_cast %16 : vector<4x16xf32> to vector<1x4x16xf32>
    %18 = vector.broadcast %5 : vector<2x1x16xf32> to vector<2x4x16xf32>
    %19 = vector.broadcast %13 : vector<1x4x16xf32> to vector<2x4x16xf32>
    %20 = arith.mulf %18, %19 : vector<2x4x16xf32>
    %21 = arith.addf %0, %20 : vector<2x4x16xf32>
    %22 = vector.broadcast %9 : vector<2x1x16xf32> to vector<2x4x16xf32>
    %23 = vector.broadcast %17 : vector<1x4x16xf32> to vector<2x4x16xf32>
    %24 = arith.mulf %22, %23 : vector<2x4x16xf32>
    %25 = arith.subf %21, %24 : vector<2x4x16xf32>
    %26 = vector.broadcast %5 : vector<2x1x16xf32> to vector<2x4x16xf32>
    %27 = vector.broadcast %17 : vector<1x4x16xf32> to vector<2x4x16xf32>
    %28 = arith.mulf %26, %27 : vector<2x4x16xf32>
    %29 = arith.addf %1, %28 : vector<2x4x16xf32>
    %30 = vector.broadcast %9 : vector<2x1x16xf32> to vector<2x4x16xf32>
    %31 = vector.broadcast %13 : vector<1x4x16xf32> to vector<2x4x16xf32>
    %32 = arith.mulf %30, %31 : vector<2x4x16xf32>
    %33 = arith.addf %29, %32 : vector<2x4x16xf32>
    %c0_16 = arith.constant 0 : index
    %c1 = arith.constant 1 : index
    %c0_17 = arith.constant 0 : index
    %c0_18 = arith.constant 0 : index
    %34 = vector.load %arg2[%c0_16, %c1, %c0_17, %c0_18] : memref<1x4x2x16xbf16, #tpu.memory_space<vmem>>, vector<1x1x2x16xbf16>
    %35 = vector.shape_cast %34 : vector<1x1x2x16xbf16> to vector<2x16xbf16>
    %36 = arith.extf %35 : vector<2x16xbf16> to vector<2x16xf32>
    %37 = vector.shape_cast %36 : vector<2x16xf32> to vector<2x1x16xf32>
    %c0_19 = arith.constant 0 : index
    %c1_20 = arith.constant 1 : index
    %c0_21 = arith.constant 0 : index
    %c0_22 = arith.constant 0 : index
    %38 = vector.load %arg3[%c0_19, %c1_20, %c0_21, %c0_22] : memref<1x4x2x16xbf16, #tpu.memory_space<vmem>>, vector<1x1x2x16xbf16>
    %39 = vector.shape_cast %38 : vector<1x1x2x16xbf16> to vector<2x16xbf16>
    %40 = arith.extf %39 : vector<2x16xbf16> to vector<2x16xf32>
    %41 = vector.shape_cast %40 : vector<2x16xf32> to vector<2x1x16xf32>
    %c0_23 = arith.constant 0 : index
    %c1_24 = arith.constant 1 : index
    %c0_25 = arith.constant 0 : index
    %c0_26 = arith.constant 0 : index
    %42 = vector.load %arg4[%c0_23, %c1_24, %c0_25, %c0_26] : memref<1x4x4x16xbf16, #tpu.memory_space<vmem>>, vector<1x1x4x16xbf16>
    %43 = vector.shape_cast %42 : vector<1x1x4x16xbf16> to vector<4x16xbf16>
    %44 = arith.extf %43 : vector<4x16xbf16> to vector<4x16xf32>
    %45 = vector.shape_cast %44 : vector<4x16xf32> to vector<1x4x16xf32>
    %c0_27 = arith.constant 0 : index
    %c1_28 = arith.constant 1 : index
    %c0_29 = arith.constant 0 : index
    %c0_30 = arith.constant 0 : index
    %46 = vector.load %arg5[%c0_27, %c1_28, %c0_29, %c0_30] : memref<1x4x4x16xbf16, #tpu.memory_space<vmem>>, vector<1x1x4x16xbf16>
    %47 = vector.shape_cast %46 : vector<1x1x4x16xbf16> to vector<4x16xbf16>
    %48 = arith.extf %47 : vector<4x16xbf16> to vector<4x16xf32>
    %49 = vector.shape_cast %48 : vector<4x16xf32> to vector<1x4x16xf32>
    %50 = vector.broadcast %37 : vector<2x1x16xf32> to vector<2x4x16xf32>
    %51 = vector.broadcast %45 : vector<1x4x16xf32> to vector<2x4x16xf32>
    %52 = arith.mulf %50, %51 : vector<2x4x16xf32>
    %53 = arith.addf %25, %52 : vector<2x4x16xf32>
    %54 = vector.broadcast %41 : vector<2x1x16xf32> to vector<2x4x16xf32>
    %55 = vector.broadcast %49 : vector<1x4x16xf32> to vector<2x4x16xf32>
    %56 = arith.mulf %54, %55 : vector<2x4x16xf32>
    %57 = arith.subf %53, %56 : vector<2x4x16xf32>
    %58 = vector.broadcast %37 : vector<2x1x16xf32> to vector<2x4x16xf32>
    %59 = vector.broadcast %49 : vector<1x4x16xf32> to vector<2x4x16xf32>
    %60 = arith.mulf %58, %59 : vector<2x4x16xf32>
    %61 = arith.addf %33, %60 : vector<2x4x16xf32>
    %62 = vector.broadcast %41 : vector<2x1x16xf32> to vector<2x4x16xf32>
    %63 = vector.broadcast %45 : vector<1x4x16xf32> to vector<2x4x16xf32>
    %64 = arith.mulf %62, %63 : vector<2x4x16xf32>
    %65 = arith.addf %61, %64 : vector<2x4x16xf32>
    %c0_31 = arith.constant 0 : index
    %c2 = arith.constant 2 : index
    %c0_32 = arith.constant 0 : index
    %c0_33 = arith.constant 0 : index
    %66 = vector.load %arg2[%c0_31, %c2, %c0_32, %c0_33] : memref<1x4x2x16xbf16, #tpu.memory_space<vmem>>, vector<1x1x2x16xbf16>
    %67 = vector.shape_cast %66 : vector<1x1x2x16xbf16> to vector<2x16xbf16>
    %68 = arith.extf %67 : vector<2x16xbf16> to vector<2x16xf32>
    %69 = vector.shape_cast %68 : vector<2x16xf32> to vector<2x1x16xf32>
    %c0_34 = arith.constant 0 : index
    %c2_35 = arith.constant 2 : index
    %c0_36 = arith.constant 0 : index
    %c0_37 = arith.constant 0 : index
    %70 = vector.load %arg3[%c0_34, %c2_35, %c0_36, %c0_37] : memref<1x4x2x16xbf16, #tpu.memory_space<vmem>>, vector<1x1x2x16xbf16>
    %71 = vector.shape_cast %70 : vector<1x1x2x16xbf16> to vector<2x16xbf16>
    %72 = arith.extf %71 : vector<2x16xbf16> to vector<2x16xf32>
    %73 = vector.shape_cast %72 : vector<2x16xf32> to vector<2x1x16xf32>
    %c0_38 = arith.constant 0 : index
    %c2_39 = arith.constant 2 : index
    %c0_40 = arith.constant 0 : index
    %c0_41 = arith.constant 0 : index
    %74 = vector.load %arg4[%c0_38, %c2_39, %c0_40, %c0_41] : memref<1x4x4x16xbf16, #tpu.memory_space<vmem>>, vector<1x1x4x16xbf16>
    %75 = vector.shape_cast %74 : vector<1x1x4x16xbf16> to vector<4x16xbf16>
    %76 = arith.extf %75 : vector<4x16xbf16> to vector<4x16xf32>
    %77 = vector.shape_cast %76 : vector<4x16xf32> to vector<1x4x16xf32>
    %c0_42 = arith.constant 0 : index
    %c2_43 = arith.constant 2 : index
    %c0_44 = arith.constant 0 : index
    %c0_45 = arith.constant 0 : index
    %78 = vector.load %arg5[%c0_42, %c2_43, %c0_44, %c0_45] : memref<1x4x4x16xbf16, #tpu.memory_space<vmem>>, vector<1x1x4x16xbf16>
    %79 = vector.shape_cast %78 : vector<1x1x4x16xbf16> to vector<4x16xbf16>
    %80 = arith.extf %79 : vector<4x16xbf16> to vector<4x16xf32>
    %81 = vector.shape_cast %80 : vector<4x16xf32> to vector<1x4x16xf32>
    %82 = vector.broadcast %69 : vector<2x1x16xf32> to vector<2x4x16xf32>
    %83 = vector.broadcast %77 : vector<1x4x16xf32> to vector<2x4x16xf32>
    %84 = arith.mulf %82, %83 : vector<2x4x16xf32>
    %85 = arith.addf %57, %84 : vector<2x4x16xf32>
    %86 = vector.broadcast %73 : vector<2x1x16xf32> to vector<2x4x16xf32>
    %87 = vector.broadcast %81 : vector<1x4x16xf32> to vector<2x4x16xf32>
    %88 = arith.mulf %86, %87 : vector<2x4x16xf32>
    %89 = arith.subf %85, %88 : vector<2x4x16xf32>
    %90 = vector.broadcast %69 : vector<2x1x16xf32> to vector<2x4x16xf32>
    %91 = vector.broadcast %81 : vector<1x4x16xf32> to vector<2x4x16xf32>
    %92 = arith.mulf %90, %91 : vector<2x4x16xf32>
    %93 = arith.addf %65, %92 : vector<2x4x16xf32>
    %94 = vector.broadcast %73 : vector<2x1x16xf32> to vector<2x4x16xf32>
    %95 = vector.broadcast %77 : vector<1x4x16xf32> to vector<2x4x16xf32>
    %96 = arith.mulf %94, %95 : vector<2x4x16xf32>
    %97 = arith.addf %93, %96 : vector<2x4x16xf32>
    %c0_46 = arith.constant 0 : index
    %c3 = arith.constant 3 : index
    %c0_47 = arith.constant 0 : index
    %c0_48 = arith.constant 0 : index
    %98 = vector.load %arg2[%c0_46, %c3, %c0_47, %c0_48] : memref<1x4x2x16xbf16, #tpu.memory_space<vmem>>, vector<1x1x2x16xbf16>
    %99 = vector.shape_cast %98 : vector<1x1x2x16xbf16> to vector<2x16xbf16>
    %100 = arith.extf %99 : vector<2x16xbf16> to vector<2x16xf32>
    %101 = vector.shape_cast %100 : vector<2x16xf32> to vector<2x1x16xf32>
    %c0_49 = arith.constant 0 : index
    %c3_50 = arith.constant 3 : index
    %c0_51 = arith.constant 0 : index
    %c0_52 = arith.constant 0 : index
    %102 = vector.load %arg3[%c0_49, %c3_50, %c0_51, %c0_52] : memref<1x4x2x16xbf16, #tpu.memory_space<vmem>>, vector<1x1x2x16xbf16>
    %103 = vector.shape_cast %102 : vector<1x1x2x16xbf16> to vector<2x16xbf16>
    %104 = arith.extf %103 : vector<2x16xbf16> to vector<2x16xf32>
    %105 = vector.shape_cast %104 : vector<2x16xf32> to vector<2x1x16xf32>
    %c0_53 = arith.constant 0 : index
    %c3_54 = arith.constant 3 : index
    %c0_55 = arith.constant 0 : index
    %c0_56 = arith.constant 0 : index
    %106 = vector.load %arg4[%c0_53, %c3_54, %c0_55, %c0_56] : memref<1x4x4x16xbf16, #tpu.memory_space<vmem>>, vector<1x1x4x16xbf16>
    %107 = vector.shape_cast %106 : vector<1x1x4x16xbf16> to vector<4x16xbf16>
    %108 = arith.extf %107 : vector<4x16xbf16> to vector<4x16xf32>
    %109 = vector.shape_cast %108 : vector<4x16xf32> to vector<1x4x16xf32>
    %c0_57 = arith.constant 0 : index
    %c3_58 = arith.constant 3 : index
    %c0_59 = arith.constant 0 : index
    %c0_60 = arith.constant 0 : index
    %110 = vector.load %arg5[%c0_57, %c3_58, %c0_59, %c0_60] : memref<1x4x4x16xbf16, #tpu.memory_space<vmem>>, vector<1x1x4x16xbf16>
    %111 = vector.shape_cast %110 : vector<1x1x4x16xbf16> to vector<4x16xbf16>
    %112 = arith.extf %111 : vector<4x16xbf16> to vector<4x16xf32>
    %113 = vector.shape_cast %112 : vector<4x16xf32> to vector<1x4x16xf32>
    %114 = vector.broadcast %101 : vector<2x1x16xf32> to vector<2x4x16xf32>
    %115 = vector.broadcast %109 : vector<1x4x16xf32> to vector<2x4x16xf32>
    %116 = arith.mulf %114, %115 : vector<2x4x16xf32>
    %117 = arith.addf %89, %116 : vector<2x4x16xf32>
    %118 = vector.broadcast %105 : vector<2x1x16xf32> to vector<2x4x16xf32>
    %119 = vector.broadcast %113 : vector<1x4x16xf32> to vector<2x4x16xf32>
    %120 = arith.mulf %118, %119 : vector<2x4x16xf32>
    %121 = arith.subf %117, %120 : vector<2x4x16xf32>
    %122 = vector.broadcast %101 : vector<2x1x16xf32> to vector<2x4x16xf32>
    %123 = vector.broadcast %113 : vector<1x4x16xf32> to vector<2x4x16xf32>
    %124 = arith.mulf %122, %123 : vector<2x4x16xf32>
    %125 = arith.addf %97, %124 : vector<2x4x16xf32>
    %126 = vector.broadcast %105 : vector<2x1x16xf32> to vector<2x4x16xf32>
    %127 = vector.broadcast %109 : vector<1x4x16xf32> to vector<2x4x16xf32>
    %128 = arith.mulf %126, %127 : vector<2x4x16xf32>
    %129 = arith.addf %125, %128 : vector<2x4x16xf32>
    %c0_61 = arith.constant 0 : index
    %c0_62 = arith.constant 0 : index
    %c0_63 = arith.constant 0 : index
    %c0_64 = arith.constant 0 : index
    %130 = vector.load %arg6[%c0_61, %c0_62, %c0_63, %c0_64] : memref<1x2x4x16xf32, #tpu.memory_space<vmem>>, vector<1x2x4x16xf32>
    %131 = vector.shape_cast %130 : vector<1x2x4x16xf32> to vector<2x4x16xf32>
    %132 = vector.shape_cast %121 : vector<2x4x16xf32> to vector<1x2x4x16xf32>
    tpu.vector_store %arg6[%c0_61, %c0_62, %c0_63, %c0_64], %132 {strides = array<i32>} : memref<1x2x4x16xf32, #tpu.memory_space<vmem>>, vector<1x2x4x16xf32>,
    %c0_65 = arith.constant 0 : index
    %c0_66 = arith.constant 0 : index
    %c0_67 = arith.constant 0 : index
    %c0_68 = arith.constant 0 : index
    %133 = vector.load %arg7[%c0_65, %c0_66, %c0_67, %c0_68] : memref<1x2x4x16xf32, #tpu.memory_space<vmem>>, vector<1x2x4x16xf32>
    %134 = vector.shape_cast %133 : vector<1x2x4x16xf32> to vector<2x4x16xf32>
    %135 = vector.shape_cast %129 : vector<2x4x16xf32> to vector<1x2x4x16xf32>
    tpu.vector_store %arg7[%c0_65, %c0_66, %c0_67, %c0_68], %135 {strides = array<i32>} : memref<1x2x4x16xf32, #tpu.memory_space<vmem>>, vector<1x2x4x16xf32>,
    return
  }
  func.func @transform_0(%arg0: i32, %arg1: i32) -> (i32, i32, i32, i32) {
    %c0_i32 = arith.constant 0 : i32
    %c0_i32_0 = arith.constant 0 : i32
    %c0_i32_1 = arith.constant 0 : i32
    return %arg0, %c0_i32, %c0_i32_0, %arg1 : i32, i32, i32, i32
  }
  func.func @transform_1(%arg0: i32, %arg1: i32) -> (i32, i32, i32, i32) {
    %c0_i32 = arith.constant 0 : i32
    %c0_i32_0 = arith.constant 0 : i32
    %c0_i32_1 = arith.constant 0 : i32
    return %arg0, %c0_i32, %c0_i32_0, %arg1 : i32, i32, i32, i32
  }
  func.func @transform_2(%arg0: i32, %arg1: i32) -> (i32, i32, i32, i32) {
    %c0_i32 = arith.constant 0 : i32
    %c0_i32_0 = arith.constant 0 : i32
    %c0_i32_1 = arith.constant 0 : i32
    return %arg0, %c0_i32, %c0_i32_0, %arg1 : i32, i32, i32, i32
  }
  func.func @transform_3(%arg0: i32, %arg1: i32) -> (i32, i32, i32, i32) {
    %c0_i32 = arith.constant 0 : i32
    %c0_i32_0 = arith.constant 0 : i32
    %c0_i32_1 = arith.constant 0 : i32
    return %arg0, %c0_i32, %c0_i32_0, %arg1 : i32, i32, i32, i32
  }
  func.func @transform_4(%arg0: i32, %arg1: i32) -> (i32, i32, i32, i32) {
    %c0_i32 = arith.constant 0 : i32
    %c0_i32_0 = arith.constant 0 : i32
    %c0_i32_1 = arith.constant 0 : i32
    return %arg0, %c0_i32, %c0_i32_0, %arg1 : i32, i32, i32, i32
  }
  func.func @transform_5(%arg0: i32, %arg1: i32) -> (i32, i32, i32, i32) {
    %c0_i32 = arith.constant 0 : i32
    %c0_i32_0 = arith.constant 0 : i32
    %c0_i32_1 = arith.constant 0 : i32
    return %arg0, %c0_i32, %c0_i32_0, %arg1 : i32, i32, i32, i32
  }
}

module attributes {stable_mosaic.version = 11 : i64} {
  func.func @_vft_kernel(%arg0: i32, %arg1: i32, %arg2: i32, %arg3: memref<1x4x256xbf16, #tpu.memory_space<vmem>>, %arg4: memref<1x128x128xbf16, #tpu.memory_space<vmem>>, %arg5: memref<1x4x128xf32, #tpu.memory_space<vmem>>) attributes {dimension_semantics = [#tpu.dimension_semantics<parallel>, #tpu.dimension_semantics<parallel>, #tpu.dimension_semantics<arbitrary>], iteration_bounds = array<i64: 2, 1, 2>, scalar_prefetch = 0 : i64, scratch_operands = 0 : i64, tpu.core_type = #tpu.core_type<tc>, window_params = [{transform_indices = @transform_0, window_bounds = array<i64: 1, 4, 256>}, {transform_indices = @transform_1, window_bounds = array<i64: 1, 128, 128>}, {transform_indices = @transform_2, window_bounds = array<i64: 1, 4, 128>}]} {
    %c0_i32 = arith.constant 0 : i32
    %0 = arith.cmpi eq, %arg2, %c0_i32 : i32
    %1 = arith.extui %0 : i1 to i32
    %c0_i32_0 = arith.constant 0 : i32
    %2 = arith.cmpi ne, %1, %c0_i32_0 : i32
    scf.if %2 {
      %cst_11 = arith.constant 0.000000e+00 : f32
      %17 = vector.broadcast %cst_11 : f32 to vector<1x4x128xf32>
      %c0_12 = arith.constant 0 : index
      %c0_13 = arith.constant 0 : index
      %c0_14 = arith.constant 0 : index
      %18 = vector.load %arg5[%c0_12, %c0_13, %c0_14] : memref<1x4x128xf32, #tpu.memory_space<vmem>>, vector<1x4x128xf32>
      tpu.vector_store %arg5[%c0_12, %c0_13, %c0_14], %17 {strides = array<i32>} : memref<1x4x128xf32, #tpu.memory_space<vmem>>, vector<1x4x128xf32>,
    } else {
    }
    %c128_i32 = arith.constant 128 : i32
    %3 = arith.muli %arg2, %c128_i32 : i32
    %4 = tpu.assume_multiple %3, 128 : i32
    %c0 = arith.constant 0 : index
    %c0_1 = arith.constant 0 : index
    %5 = arith.index_cast %4 : i32 to index
    %6 = vector.load %arg3[%c0, %c0_1, %5] : memref<1x4x256xbf16, #tpu.memory_space<vmem>>, vector<1x4x128xbf16>
    %7 = vector.shape_cast %6 : vector<1x4x128xbf16> to vector<4x128xbf16>
    %c0_2 = arith.constant 0 : index
    %c0_3 = arith.constant 0 : index
    %c0_4 = arith.constant 0 : index
    %8 = vector.load %arg5[%c0_2, %c0_3, %c0_4] : memref<1x4x128xf32, #tpu.memory_space<vmem>>, vector<1x4x128xf32>
    %9 = vector.shape_cast %8 : vector<1x4x128xf32> to vector<4x128xf32>
    %c0_5 = arith.constant 0 : index
    %c0_6 = arith.constant 0 : index
    %c0_7 = arith.constant 0 : index
    %10 = vector.load %arg4[%c0_5, %c0_6, %c0_7] : memref<1x128x128xbf16, #tpu.memory_space<vmem>>, vector<1x128x128xbf16>
    %11 = vector.shape_cast %10 : vector<1x128x128xbf16> to vector<128x128xbf16>
    %cst = arith.constant dense<0.000000e+00> : vector<4x128xf32>
    %12 = tpu.matmul %7, %11, %cst {dimension_numbers = #tpu.dot_dimension_numbers<[1], [0], [0], [1], [0, 0, 1, 1], [], []>} : vector<4x128xbf16>, vector<128x128xbf16>, vector<4x128xf32> -> vector<4x128xf32>
    %13 = arith.addf %9, %12 : vector<4x128xf32>
    %c0_8 = arith.constant 0 : index
    %c0_9 = arith.constant 0 : index
    %c0_10 = arith.constant 0 : index
    %14 = vector.load %arg5[%c0_8, %c0_9, %c0_10] : memref<1x4x128xf32, #tpu.memory_space<vmem>>, vector<1x4x128xf32>
    %15 = vector.shape_cast %14 : vector<1x4x128xf32> to vector<4x128xf32>
    %16 = vector.shape_cast %13 : vector<4x128xf32> to vector<1x4x128xf32>
    tpu.vector_store %arg5[%c0_8, %c0_9, %c0_10], %16 {strides = array<i32>} : memref<1x4x128xf32, #tpu.memory_space<vmem>>, vector<1x4x128xf32>,
    return
  }
  func.func @transform_0(%arg0: i32, %arg1: i32, %arg2: i32) -> (i32, i32, i32) {
    %c0_i32 = arith.constant 0 : i32
    %c0_i32_0 = arith.constant 0 : i32
    %c0_i32_1 = arith.constant 0 : i32
    return %arg0, %c0_i32, %c0_i32_0 : i32, i32, i32
  }
  func.func @transform_1(%arg0: i32, %arg1: i32, %arg2: i32) -> (i32, i32, i32) {
    %c0_i32 = arith.constant 0 : i32
    return %arg0, %arg2, %arg1 : i32, i32, i32
  }
  func.func @transform_2(%arg0: i32, %arg1: i32, %arg2: i32) -> (i32, i32, i32) {
    %c0_i32 = arith.constant 0 : i32
    %c0_i32_0 = arith.constant 0 : i32
    return %arg0, %c0_i32, %arg1 : i32, i32, i32
  }
}

</mosaic_0001>

<bundles_post_ra>
// kernel: tile.9
= control target key start
LH: loop header
LB: loop body
LE: loop exit
PB: predicated region body
PF: predicated region fallthrough
CT: control target
= control target key end

     0   :  { %s22_s0 = inlined_call_operand.vmem [shape: f32[7], index: 0, kind: input, shape index: {}]   ;;  %s23_s1 = inlined_call_operand.vmem [shape: f32[8,7], index: 1, kind: output, shape index: {}]  }
   0x1   :  { %v4_v0 = vld [vmem:[%s22_s0] ss:$0 sm:$0xff] }
   0x2   :  { %5 = vst [vmem:[%s23_s1] sm:$0xff] %v4_v0 }

// kernel: mul.34
= control target key start
LH: loop header
LB: loop body
LE: loop exit
PB: predicated region body
PF: predicated region fallthrough
CT: control target
= control target key end

     0   :  { %s67_s10 = smov 49   ;;  %s68_s11 = smov 35   ;;  %vm3_vm0 = vcmask 56320   ;;  %vm9_vm1 = vcmask 458120   ;;  %vm15_vm2 = vcmask 400720   ;;  %vm21_vm3 = vcmask 343320   ;;  %s111_s0 = inlined_call_operand.vmem [shape: f32[8,7], index: 0, kind: input, shape index: {}]   ;;  %s112_s1 = inlined_call_operand.vmem [shape: f32[56], index: 1, kind: output, shape index: {}]  }
   0x1   :  { %v53_v0 = vld [vmem:[%s111_s0 + $0x7] sm:$0x1]   ;;  %v55_v1 = vld [vmem:[%s111_s0 + $0x5] sm:$0x1]   ;;  %v57_v2 = vld [vmem:[%s111_s0 + $0x3] sm:$0x1]  }
   0x2   :  { %7 = vrot.lane.b32.xlu0 %v53_v0, %s67_s10  ;;  %19 = vrot.lane.b32.xlu1 %v55_v1, %s68_s11  ;;  %s69_s14 = smov 21   ;;  %v54_v3 = vld [vmem:[%s111_s0 + $0x6] sm:$0x1]   ;;  %v56_v4 = vld [vmem:[%s111_s0 + $0x4] sm:$0x1]   ;;  %s70_s21 = smov 42  }
   0x3   :  { %31 = vrot.lane.b32.xlu2 %v57_v2, %s69_s14  ;;  %v58_v5 = vld [vmem:[%s111_s0 + $0x2] sm:$0x1]   ;;  %s71_s22 = smov 28   ;;  %s72_s23 = smov 14   ;;  %v59_v6 = vld [vmem:[%s111_s0 + $0x1] sm:$0x1]  }
   0x4   :  { %s73_s26 = smov 7   ;;  %v2_v7 = vld [vmem:[%s111_s0] sm:$0x1]   ;;  %vm27_vm4 = vcmask 285920   ;;  %vm33_vm5 = vcmask 228520   ;;  %vm39_vm6 = vcmask 171120  }
   0x5   :  { %4 = vst.msk [vmem:[#allocation0] sm:$0x1] %vm3_vm0, %v2_v7   ;;  %vm45_vm7 = vcmask 113720  }
   0xa   :  { %13 = vrot.lane.b32.xlu0 %v54_v3, %s70_s21  ;;  %25 = vrot.lane.b32.xlu1 %v56_v4, %s71_s22 }
   0xb   :  { %37 = vrot.lane.b32.xlu2 %v58_v5, %s72_s23 }
  0x12   :  { %43 = vrot.lane.b32.xlu0 %v59_v6, %s73_s26 }
  0x5d   :  { %v32_v8 = vpop.permute.xlu2 %31  }
  0x65   :  { %v38_v9 = vpop.permute.xlu2 %37  }
  0x74   :  { %v8_v10 = vpop.permute.xlu0 %7   ;;  %v20_v11 = vpop.permute.xlu1 %19  }
  0x75   :  { %10 = vst.msk [vmem:[#allocation0] sm:$0x1] %vm9_vm1, %v8_v10  }
  0x7c   :  { %v14_v12 = vpop.permute.xlu0 %13   ;;  %v26_v13 = vpop.permute.xlu1 %25  }
  0x7d   :  { %16 = vst.msk [vmem:[#allocation0] sm:$0x1] %vm15_vm2, %v14_v12  }
  0x7e   :  { %22 = vst.msk [vmem:[#allocation0] sm:$0x1] %vm21_vm3, %v20_v11  }
  0x7f   :  { %28 = vst.msk [vmem:[#allocation0] sm:$0x1] %vm27_vm4, %v26_v13  }
  0x80   :  { %34 = vst.msk [vmem:[#allocation0] sm:$0x1] %vm33_vm5, %v32_v8  }
  0x81   :  { %40 = vst.msk [vmem:[#allocation0] sm:$0x1] %vm39_vm6, %v38_v9  }
  0x84   :  { %v44_v14 = vpop.permute.xlu0 %43  }
  0x85   :  { %46 = vst.msk [vmem:[#allocation0] sm:$0x1] %vm45_vm7, %v44_v14  }
  0x8c   :  { %v49_v15 = vld [vmem:[#allocation0] sm:$0x1] }
  0x8d   :  { %52 = vst [vmem:[%s112_s1] sm:$0x1] %v49_v15 }

// kernel: custom-call.2
= control target key start
LH: loop header
LB: loop body
LE: loop exit
PB: predicated region body
PF: predicated region fallthrough
CT: control target
= control target key end

     0   :  { %2 = vsyncpa [#allocation0], 0  ;;  %s55_s0 = inlined_call_operand.hbm [shape: c64[4,4,4,4], index: 0, kind: input, shape index: {}]   ;;  %s56_s1 = inlined_call_operand.vmem [shape: f32[4,4,4,4], index: 1, kind: output, shape index: {}]  }
   0x1   :  { %s4_s8 = sshll.u32 %s55_s0, 4  ;;  %s6_s11 = sshll.u32 %s56_s1, 4  ;;  %s5_s8 = int_to_ptr.hbm [resolvable:$true] %s4_s8  ;;  %s7_s11 = int_to_ptr.vmem [resolvable:$true] %s6_s11 }
   0x2   :  { %9 = dma.hbm_to_vmem [thread:$0]  %s5_s8, 1024, %s7_s11, [#allocation0] }
   0x3   :  { %37 = dma.done.wait [#allocation0], 1024  }
   0x4   :  { %38 = vsyncadd [#allocation0], 4294966272 }
   0x5   :  { %12 = vsyncpa [#allocation0], 1 }

// kernel: custom-call.3
= control target key start
LH: loop header
LB: loop body
LE: loop exit
PB: predicated region body
PF: predicated region fallthrough
CT: control target
= control target key end

     0   :  { %s56_s0 = inlined_call_operand.hbm [shape: c64[4,4,4,4], index: 0, kind: input, shape index: {}]   ;;  %s57_s1 = inlined_call_operand.vmem [shape: f32[4,4,4,4], index: 1, kind: output, shape index: {}]  }
   0x1   :  { %s2_s8 = scalar_lea.hbm %s56_s0, 64 }
   0x2   :  { %3 = vsyncpa [#allocation0], 0  ;;  %s5_s9 = sshll.u32 %s2_s8, 4  ;;  %s7_s12 = sshll.u32 %s57_s1, 4  ;;  %s6_s9 = int_to_ptr.hbm [resolvable:$true] %s5_s9  ;;  %s8_s12 = int_to_ptr.vmem [resolvable:$true] %s7_s12 }
   0x3   :  { %10 = dma.hbm_to_vmem [thread:$0]  %s6_s9, 1024, %s8_s12, [#allocation0] }
   0x4   :  { %38 = dma.done.wait [#allocation0], 1024  }
   0x5   :  { %39 = vsyncadd [#allocation0], 4294966272 }
   0x6   :  { %13 = vsyncpa [#allocation0], 1 }

// kernel: neg.5
= control target key start
LH: loop header
LB: loop body
LE: loop exit
PB: predicated region body
PF: predicated region fallthrough
CT: control target
= control target key end

     0   :  { %s40_s0 = inlined_call_operand.vmem [shape: f32[2,4,24], index: 0, kind: input, shape index: {}]   ;;  %s41_s1 = inlined_call_operand.vmem [shape: f32[2,4,24], index: 1, kind: output, shape index: {}]  }
   0x1   :  { %v2_v0 = vld [vmem:[%s40_s0] sm:$0xf]  ;;  %v16_v1 = vld [vmem:[%s40_s0 + $0x4] sm:$0xf] }
   0x2   :  { %v5_v2 = vxor.u32 2147483648, %v2_v0  ;;  %v12_v3 = vxor.u32 2147483648, %v16_v1 }
   0x4   :  { %7 = vst [vmem:[%s41_s1] sm:$0xf] %v5_v2 }
   0x5   :  { %17 = vst [vmem:[%s41_s1 + $0x4] sm:$0xf] %v12_v3 }

// kernel: spectral_conv2d_dse_forward.4
= control target key start
LH: loop header
LB: loop body
LE: loop exit
PB: predicated region body
PF: predicated region fallthrough
CT: control target
= control target key end

     0   :  { %s892_s18 = smov 0   ;;  %s894_s19 = smov 0   ;;  %s1255_s0 = inlined_call_operand.vmem [shape: bf16[2,4,2,16], index: 0, kind: input, shape index: {}]   ;;  %s1256_s1 = inlined_call_operand.vmem [shape: bf16[2,4,2,16], index: 1, kind: input, shape index: {}]   ;;  %s1257_s2 = inlined_call_operand.vmem [shape: bf16[2,4,4,16], index: 2, kind: input, shape index: {}]   ;;  %s1258_s3 = inlined_call_operand.vmem [shape: bf16[2,4,4,16], index: 3, kind: input, shape index: {}]   ;;  %s1259_s4 = inlined_call_operand.vmem [shape: f32[2,2,4,16], index: 4, kind: output, shape index: {0}]   ;;  %s1260_s5 = inlined_call_operand.vmem [shape: f32[2,2,4,16], index: 5, kind: output, shape index: {1}]  }
   0x1   :  { %s896_s20 = smov 0  }
   0x2 LB: > { %s28_s21 = sadd.s32 1, %s856_s19  ;;  %p785_p0 = scmp.ge.s32.totalorder %s860_s20, 1  ;;  %s860_s20 = sphi %s896_s20, %s16_s20   ;;  %s856_s19 = sphi %s894_s19, %s1264_s19   ;;  %s852_s18 = sphi %s892_s18, %s1263_s18  }
   0x3   : > { %p30_p1 = scmp.ge.s32.totalorder %s28_s21, 2  ;;  %p254_p2 = scmp.lt.s32.totalorder %s860_s20, 3 }
   0x5   : > { %s1266_s21 = smov (%p30_p1, %s28_s21), 0  ;;  %p255_p3 = pnand %p785_p0, %p254_p2 }
   0x6   : > { %p318_p4 = scmp.lt.s32.totalorder (!%p255_p3), %s852_s18, 1 }
   0x7   : > { %258 = sbr.rel (%p255_p3) target bundleno = 69 (0x45), region = 36 }
   0xc   : > { %s1268_s18 = smov (!%p318_p4, %s852_s18), 1  ;;  %vm370_vm0 = vcmask 1040384   ;;  %vm372_vm1 = vcmask 1042434   ;;  %vm374_vm2 = vcmask 1041408   ;;  %vm376_vm3 = vcmask 1041409  }
   0xd   : > { %s786_s22 = sshll.u32 %s1268_s18, 2  ;;  %s910_s23 = sshll.u32 %s1268_s18, 3  ;;  %vm378_vm4 = vcmask 1043459   ;;  %vm380_vm5 = vcmask 1042433   ;;  %vm598_vm6 = vcmask 125952  }
   0xe   : > { %s915_s26 = scalar_lea.vmem %s1255_s0, %s786_s22  ;;  %s920_s29 = scalar_lea.vmem %s1256_s1, %s786_s22 }
   0xf   : > { %s926_s7 = scalar_lea.vmem %s1257_s2, %s910_s23  ;;  %s932_s10 = scalar_lea.vmem %s1258_s3, %s910_s23  ;;  %v364_v0 = vld [vmem:[%s915_s26] sm:$0x1]  ;;  %v796_v2 = vld [vmem:[%s915_s26 + $0x1] sm:$0x1]  ;;  %v800_v34 = vld [vmem:[%s915_s26 + $0x2] sm:$0x1] }
  0x10   : > { %v383_v1 = vld [vmem:[%s920_s29] sm:$0x1]  ;;  %v937_v3 = vunpack.c.l.bf16 %v364_v0  ;;  %v943_v7 = vunpack.c.l.bf16 %v796_v2  ;;  %v797_v8 = vld [vmem:[%s920_s29 + $0x1] sm:$0x1]  ;;  %v798_v28 = vld [vmem:[%s926_s7 + $0x2] sm:$0x3]  ;;  %v1028_v48 = vunpack.c.l.bf16 %v800_v34  ;;  %s1164_s13 = scalar_lea.vmem %s1259_s4, %s910_s23  ;;  %s363_s16 = scalar_lea.vmem %s1260_s5, %s910_s23 }
  0x11   : > { %v939_v4 = vunpack.c.l.bf16 %v383_v1  ;;  %v396_v5 = vld [vmem:[%s926_s7] sm:$0x3]  ;;  %v950_v11 = vunpack.c.l.bf16 %v797_v8  ;;  %v799_v29 = vld [vmem:[%s932_s10 + $0x2] sm:$0x3]  ;;  %v802_v40 = vld [vmem:[%s926_s7 + $0x4] sm:$0x3]  ;;  %v1015_v43 = vunpack.c.l.bf16 %v798_v28 }
  0x12   : > { %v398_v6 = vld [vmem:[%s932_s10] sm:$0x3]  ;;  %v946_v9 = vunpack.c.l.bf16 %v396_v5  ;;  %v367_v12 = vrot.slane %v937_v3, 1  ;;  %v368_v13 = vrot.slane %v937_v3, 2  ;;  %v369_v14 = vrot.slane %v937_v3, 3 }
  0x13   : > { %v948_v10 = vunpack.c.l.bf16 %v398_v6  ;;  %v386_v15 = vrot.slane %v939_v4, 1  ;;  %v387_v16 = vrot.slane %v939_v4, 2  ;;  %v388_v17 = vrot.slane %v939_v4, 3  ;;  %v801_v35 = vld [vmem:[%s920_s29 + $0x2] sm:$0x1] }
  0x14   : > { %v428_v18 = vrot.slane %v943_v7, 1  ;;  %v429_v19 = vrot.slane %v943_v7, 2  ;;  %v371_v20 = vsel %vm370_vm0, %v937_v3, %v367_v12  ;;  %v373_v21 = vsel %vm372_vm1, %v368_v13, %v369_v14  ;;  %v803_v41 = vld [vmem:[%s932_s10 + $0x4] sm:$0x3]  ;;  %v804_v54 = vld [vmem:[%s915_s26 + $0x3] sm:$0x1] }
  0x15   : > { %v389_v22 = vsel %vm370_vm0, %v939_v4, %v386_v15  ;;  %v430_v23 = vrot.slane %v943_v7, 3  ;;  %v975_v24 = vsel %vm374_vm2, %v371_v20, %v373_v21  ;;  %v390_v25 = vsel %vm372_vm1, %v387_v16, %v388_v17  ;;  %v805_v59 = vld [vmem:[%s920_s29 + $0x3] sm:$0x1] }
  0x16   : > { %v431_v26 = vsel %vm370_vm0, %v943_v7, %v428_v18  ;;  %v442_v27 = vrot.slane %v950_v11, 1  ;;  %v990_v30 = vsel %vm374_vm2, %v389_v22, %v390_v25  ;;  %v400_v31 = vperm.slane %v975_v24, 0 }
  0x17   : > { %v432_v32 = vsel %vm372_vm1, %v429_v19, %v430_v23  ;;  %v443_v33 = vrot.slane %v950_v11, 2  ;;  %v408_v36 = vperm.slane %v990_v30, 0  ;;  %v444_v38 = vrot.slane %v950_v11, 3 }
  0x18   : > { %v1003_v37 = vsel %vm374_vm2, %v431_v26, %v432_v32  ;;  %v445_v39 = vsel %vm370_vm0, %v950_v11, %v442_v27  ;;  %v404_v42 = vmul.f32 %v400_v31, %v946_v9  ;;  %v1017_v44 = vunpack.c.l.bf16 %v799_v29  ;;  %v806_v29 = vld [vmem:[%s926_s7 + $0x6] sm:$0x3] }
  0x19   : > { %v458_v45 = vperm.slane %v1003_v37, 0  ;;  %v412_v46 = vmul.f32 %v408_v36, %v948_v10  ;;  %v446_v47 = vsel %vm372_vm1, %v443_v33, %v444_v38  ;;  %v1030_v49 = vunpack.c.l.bf16 %v801_v35 }
  0x1a   : > { %v1033_v50 = vsel %vm374_vm2, %v445_v39, %v446_v47  ;;  %v1038_v52 = vunpack.c.l.bf16 %v802_v40  ;;  %v1040_v53 = vunpack.c.l.bf16 %v803_v41  ;;  %v486_v57 = vrot.slane %v1028_v48, 1  ;;  %v807_v40 = vld [vmem:[%s932_s10 + $0x6] sm:$0x3] }
  0x1b   : > { %v462_v51 = vmul.f32 %v458_v45, %v1015_v43  ;;  %v414_v55 = vsub.f32 %v404_v42, %v412_v46  ;;  %v466_v56 = vperm.slane %v1033_v50, 0  ;;  %v487_v58 = vrot.slane %v1028_v48, 2 }
  0x1c   : > { %v488_v60 = vrot.slane %v1028_v48, 3  ;;  %v500_v61 = vrot.slane %v1030_v49, 1  ;;  %v501_v62 = vrot.slane %v1030_v49, 2  ;;  %v502_v63 = vrot.slane %v1030_v49, 3 }
  0x1d   : > { %v464_v0 = vadd.f32 %v462_v51, %v414_v55  ;;  %v470_v1 = vmul.f32 %v466_v56, %v1017_v44  ;;  %v489_v2 = vsel %vm370_vm0, %v1028_v48, %v486_v57  ;;  %v1058_v5 = vunpack.c.l.bf16 %v804_v54 }
  0x1e   : > { %v490_v6 = vsel %vm372_vm1, %v487_v58, %v488_v60  ;;  %v503_v8 = vsel %vm370_vm0, %v1030_v49, %v500_v61  ;;  %v504_v20 = vsel %vm372_vm1, %v501_v62, %v502_v63  ;;  %v1074_v21 = vunpack.c.l.bf16 %v805_v59 }
  0x1f   : > { %v472_v22 = vsub.f32 %v464_v0, %v470_v1  ;;  %v1077_v25 = vsel %vm374_vm2, %v489_v2, %v490_v6  ;;  %v1080_v26 = vsel %vm374_vm2, %v503_v8, %v504_v20  ;;  %v544_v28 = vrot.slane %v1058_v5, 1 }
  0x20   : > { %v516_v32 = vperm.slane %v1077_v25, 0  ;;  %v1261_v34 = vperm.slane %v1080_v26, 0  ;;  %v545_v35 = vrot.slane %v1058_v5, 2  ;;  %v546_v39 = vrot.slane %v1058_v5, 3 }
  0x21   : > { %v547_v41 = vsel %vm370_vm0, %v1058_v5, %v544_v28  ;;  %v558_v42 = vrot.slane %v1074_v21, 1  ;;  %v559_v46 = vrot.slane %v1074_v21, 2  ;;  %v560_v47 = vrot.slane %v1074_v21, 3 }
  0x22   : > { %v520_v51 = vmul.f32 %v516_v32, %v1038_v52  ;;  %v528_v54 = vmul.f32 %v1261_v34, %v1040_v53  ;;  %v548_v55 = vsel %vm372_vm1, %v545_v35, %v546_v39  ;;  %v1101_v59 = vunpack.c.l.bf16 %v806_v29 }
  0x23   : > { %v1104_v0 = vsel %vm374_vm2, %v547_v41, %v548_v55  ;;  %v561_v1 = vsel %vm370_vm0, %v1074_v21, %v558_v42  ;;  %v562_v2 = vsel %vm372_vm1, %v559_v46, %v560_v47  ;;  %v1109_v6 = vunpack.c.l.bf16 %v807_v40 }
  0x24   : > { %v522_v8 = vadd.f32 %v520_v51, %v472_v22  ;;  %v1112_v20 = vsel %vm374_vm2, %v561_v1, %v562_v2  ;;  %v574_v34 = vperm.slane %v1104_v0, 0  ;;  %v377_v29 = vsel %vm376_vm3, %v937_v3, %v367_v12 }
  0x25   : > { %v582_v41 = vperm.slane %v1112_v20, 0  ;;  %v379_v40 = vsel %vm378_vm4, %v368_v13, %v369_v14  ;;  %v392_v22 = vsel %vm376_vm3, %v939_v4, %v386_v15  ;;  %v393_v12 = vsel %vm378_vm4, %v387_v16, %v388_v17 }
  0x26   : > { %v530_v51 = vsub.f32 %v522_v8, %v528_v54  ;;  %v578_v55 = vmul.f32 %v574_v34, %v1101_v59  ;;  %v381_v3 = vsel %vm380_vm5, %v377_v29, %v379_v40  ;;  %v394_v13 = vsel %vm380_vm5, %v392_v22, %v393_v12 }
  0x27   : > { %v586_v14 = vmul.f32 %v582_v41, %v1109_v6  ;;  %v382_v15 = vrot.slane %v381_v3, 1  ;;  %v395_v1 = vrot.slane %v394_v13, 1  ;;  %v434_v4 = vsel %vm376_vm3, %v943_v7, %v428_v18 }
  0x28   : > { %v580_v16 = vadd.f32 %v578_v55, %v530_v51  ;;  %v435_v17 = vsel %vm378_vm4, %v429_v19, %v430_v23  ;;  %v448_v54 = vsel %vm376_vm3, %v950_v11, %v442_v27  ;;  %v449_v2 = vsel %vm378_vm4, %v443_v33, %v444_v38 }
  0x29   : > { %v401_v7 = vperm.slane %v382_v15, 0  ;;  %v409_v18 = vperm.slane %v395_v1, 0  ;;  %v436_v19 = vsel %vm380_vm5, %v434_v4, %v435_v17  ;;  %v450_v23 = vsel %vm380_vm5, %v448_v54, %v449_v2 }
  0x2a   : > { %v588_v8 = vsub.f32 %v580_v16, %v586_v14  ;;  %v437_v27 = vrot.slane %v436_v19, 1  ;;  %v451_v29 = vrot.slane %v450_v23, 1  ;;  %v492_v11 = vsel %vm376_vm3, %v1028_v48, %v486_v57 }
  0x2b   : > { %v405_v33 = vmul.f32 %v401_v7, %v946_v9  ;;  %v413_v38 = vmul.f32 %v409_v18, %v948_v10  ;;  %v493_v40 = vsel %vm378_vm4, %v487_v58, %v488_v60  ;;  %v506_v22 = vsel %vm376_vm3, %v1030_v49, %v500_v61 }
  0x2c   : > { %599 = vst.msk [vmem:[%s1164_s13] sm:$0xf] %vm598_vm6, %v588_v8  ;;  %v459_v12 = vperm.slane %v437_v27, 0  ;;  %v467_v51 = vperm.slane %v451_v29, 0  ;;  %v494_v57 = vsel %vm380_vm5, %v492_v11, %v493_v40  ;;  %v507_v55 = vsel %vm378_vm4, %v501_v62, %v502_v63 }
  0x2d   : > { %v415_v48 = vsub.f32 %v405_v33, %v413_v38  ;;  %v495_v3 = vrot.slane %v494_v57, 1  ;;  %v508_v58 = vsel %vm380_vm5, %v506_v22, %v507_v55  ;;  %v550_v60 = vsel %vm376_vm3, %v1058_v5, %v544_v28 }
  0x2e   : > { %v463_v61 = vmul.f32 %v459_v12, %v1015_v43  ;;  %v471_v13 = vmul.f32 %v467_v51, %v1017_v44  ;;  %v509_v14 = vrot.slane %v508_v58, 1  ;;  %v551_v15 = vsel %vm378_vm4, %v545_v35, %v546_v39 }
  0x2f   : > { %v517_v1 = vperm.slane %v495_v3, 0  ;;  %v552_v4 = vsel %vm380_vm5, %v550_v60, %v551_v15  ;;  %v564_v49 = vsel %vm376_vm3, %v1074_v21, %v558_v42  ;;  %v565_v62 = vsel %vm378_vm4, %v559_v46, %v560_v47 }
  0x30   : > { %v465_v63 = vadd.f32 %v463_v61, %v415_v48  ;;  %v525_v16 = vperm.slane %v509_v14, 0  ;;  %v553_v17 = vrot.slane %v552_v4, 1  ;;  %v566_v5 = vsel %vm380_vm5, %v564_v49, %v565_v62 }
  0x31   : > { %v521_v28 = vmul.f32 %v517_v1, %v1038_v52  ;;  %v567_v54 = vrot.slane %v566_v5, 1  ;;  %v416_v35 = vmul.f32 %v400_v31, %v948_v10  ;;  %v420_v39 = vmul.f32 %v408_v36, %v946_v9 }
  0x32   : > { %v473_v2 = vsub.f32 %v465_v63, %v471_v13  ;;  %v529_v21 = vmul.f32 %v525_v16, %v1040_v53  ;;  %v575_v42 = vperm.slane %v553_v17, 0  ;;  %v474_v46 = vmul.f32 %v458_v45, %v1017_v44 }
  0x33   : > { %v583_v47 = vperm.slane %v567_v54, 0  ;;  %v422_v19 = vadd.f32 %v420_v39, %v416_v35  ;;  %v478_v23 = vmul.f32 %v466_v56, %v1015_v43  ;;  %v532_v30 = vmul.f32 %v516_v32, %v1040_v53 }
  0x34   : > { %v523_v24 = vadd.f32 %v521_v28, %v473_v2  ;;  %v579_v31 = vmul.f32 %v575_v42, %v1101_v59  ;;  %v417_v36 = vmul.f32 %v401_v7, %v948_v10  ;;  %v421_v45 = vmul.f32 %v409_v18, %v946_v9 }
  0x35   : > { %v476_v8 = vadd.f32 %v474_v46, %v422_v19  ;;  %v587_v37 = vmul.f32 %v583_v47, %v1109_v6  ;;  %v475_v29 = vmul.f32 %v459_v12, %v1017_v44  ;;  %v1262_v56 = vperm.slane %v1080_v26, 0 }
  0x36   : > { %v531_v27 = vsub.f32 %v523_v24, %v529_v21  ;;  %v423_v38 = vadd.f32 %v421_v45, %v417_v36  ;;  %v479_v25 = vmul.f32 %v467_v51, %v1015_v43  ;;  %v590_v10 = vmul.f32 %v574_v34, %v1109_v6 }
  0x37   : > { %v480_v50 = vadd.f32 %v478_v23, %v476_v8  ;;  %v536_v11 = vmul.f32 %v1262_v56, %v1038_v52  ;;  %v533_v9 = vmul.f32 %v517_v1, %v1040_v53  ;;  %v594_v26 = vmul.f32 %v582_v41, %v1101_v59 }
  0x38   : > { %v581_v33 = vadd.f32 %v579_v31, %v531_v27  ;;  %v477_v40 = vadd.f32 %v475_v29, %v423_v38  ;;  %v537_v22 = vmul.f32 %v525_v16, %v1038_v52  ;;  %v591_v0 = vmul.f32 %v575_v42, %v1109_v6 }
  0x39   : > { %v534_v32 = vadd.f32 %v532_v30, %v480_v50  ;;  %v595_v51 = vmul.f32 %v583_v47, %v1101_v59 }
  0x3a   : > { %v589_v7 = vsub.f32 %v581_v33, %v587_v37  ;;  %v481_v18 = vadd.f32 %v479_v25, %v477_v40 }
  0x3b   : > { %v538_v44 = vadd.f32 %v536_v11, %v534_v32 }
  0x3c   : > { %600 = vst.msk [vmem:[%s1164_s13 + $0x4] sm:$0xf] %vm598_vm6, %v589_v7  ;;  %v535_v34 = vadd.f32 %v533_v9, %v481_v18 }
  0x3d   : > { %v592_v43 = vadd.f32 %v590_v10, %v538_v44 }
  0x3e   : > { %v539_v53 = vadd.f32 %v537_v22, %v535_v34 }
  0x3f   : > { %v596_v12 = vadd.f32 %v594_v26, %v592_v43 }
  0x40   : > { %v593_v20 = vadd.f32 %v591_v0, %v539_v53 }
  0x41   : > { %601 = vst.msk [vmem:[%s363_s16] sm:$0xf] %vm598_vm6, %v596_v12 }
  0x42   : > { %v597_v41 = vadd.f32 %v595_v51, %v593_v20 }
  0x44   : > { %602 = vst.msk [vmem:[%s363_s16 + $0x4] sm:$0xf] %vm598_vm6, %v597_v41 }
  0x45 PF: > { %s16_s20 = sadd.s32 1, %s860_s20   ;;  %s1263_s18 = smov %s856_s19 }
  0x46   : > { %p13_p5 = scmp.ge.s32.totalorder %s16_s20, 4   ;;  %s1264_s19 = smov %s1266_s21 }
  0x48   :  { %15 = sbr.rel (!%p13_p5) target bundleno = 2 (0x2), region = 99 }

// kernel: spectral_conv2d_dse_forward.3
= control target key start
LH: loop header
LB: loop body
LE: loop exit
PB: predicated region body
PF: predicated region fallthrough
CT: control target
= control target key end

     0   :  { %s682_s9 = smov 0   ;;  %s684_s10 = smov 0   ;;  %s794_s0 = inlined_call_operand.vmem [shape: bf16[2,4,128], index: 0, kind: input, shape index: {}]   ;;  %s795_s1 = inlined_call_operand.vmem [shape: bf16[2,128,256], index: 1, kind: input, shape index: {}]   ;;  %s796_s2 = inlined_call_operand.vmem [shape: f32[2,4,256], index: 2, kind: output, shape index: {}]  }
   0x1   :  { %s686_s11 = smov 0   ;;  %s688_s12 = smov 0  }
   0x2   :  { %s690_s13 = smov 0   ;;  %s692_s14 = smov 0  }
   0x3   :  { %s694_s15 = smov 0  }
   0x4 LB: > { %s27_s16 = sadd.s32 1, %s656_s13  ;;  %s31_s17 = sadd.s32 1, %s660_s14  ;;  %s664_s15 = sphi %s694_s15, %s12_s15   ;;  %s660_s14 = sphi %s692_s14, %s802_s14   ;;  %s656_s13 = sphi %s690_s13, %s801_s13   ;;  %s652_s12 = sphi %s688_s12, %s800_s12   ;;  %s648_s11 = sphi %s686_s11, %s799_s11   ;;  %s644_s10 = sphi %s684_s10, %s798_s10   ;;  %s640_s9 = sphi %s682_s9, %s797_s9  }
   0x5   : > { %p29_p0 = scmp.ge.s32.totalorder %s27_s16, 2  ;;  %p75_p1 = scmp.ne.s32.totalorder %s644_s10, %s640_s9 }
   0x6   : > { %p76_p2 = scmp.eq.s32.totalorder %s664_s15, 0  ;;  %s68_s21 = sadd.s32 1, %s644_s10 }
   0x7   : > { %s804_s16 = smov (%p29_p0, %s27_s16), 0  ;;  %s806_s17 = smov (!%p29_p0, %s31_s17), %s660_s14 }
   0x8   : > { %p77_p3 = por %p76_p2, %p75_p1  ;;  %p33_p4 = scmp.ge.s32.totalorder %s806_s17, 2 }
   0x9   : > { %s64_s18 = ssub.s32 %s656_s13, %s804_s16  ;;  %p502_p6 = scmp.ge.s32.totalorder %s664_s15, 4 }
   0xa   : > { %s808_s17 = smov (%p33_p4, %s806_s17), 0 }
   0xb   : > { %s61_s19 = ssub.s32 %s660_s14, %s808_s17  ;;  %129 = sbr.rel (%p502_p6) target bundleno = 38 (0x26), region = 16 }
   0xc   : > { %s65_s20 = sor.u32 %s64_s18, %s61_s19 }
   0xd   : > { %p66_p5 = scmp.eq.s32.totalorder %s65_s20, 0 }
   0xf   : > { %s733_s22 = scalar_select %p66_p5, %s644_s10, %s68_s21  }
  0x10   : > { %139 = sbr.rel (!%p77_p3) target bundleno = 38 (0x26), region = 24  ;;  %s141_s23 = sand.u32 (%p77_p3), 1, %s644_s10  }
  0x11   : > { %s504_s24 = sshll.u32 (%p77_p3), %s660_s14, 5  ;;  %s503_s25 = sshll.u32 (%p77_p3), %s141_s23, 6 }
  0x12   : > { %s148_s26 = sadd.s32 (%p77_p3), %s656_s13, %s504_s24  ;;  %s143_s3 = scalar_lea.vmem (%p77_p3), [#allocation2], %s503_s25 }
  0x13   : > { %s505_s27 = sshll.u32 (%p77_p3), %s148_s26, 2 }
  0x14   : > { %s742_s30 = scalar_lea.vmem (%p77_p3), %s795_s1, %s505_s27 }
  0x15   : > { %v167_v0 = vld [vmem:[%s742_s30] sm:$0xf]  ;;  %v169_v1 = vld [vmem:[%s742_s30 + $0x8] sm:$0xf]  ;;  %v171_v2 = vld [vmem:[%s742_s30 + $0x10] sm:$0xf] }
  0x16   : > { %168 = vst [vmem:[%s143_s3] sm:$0xf] %v167_v0  ;;  %v173_v3 = vld [vmem:[%s742_s30 + $0x18] sm:$0xf]  ;;  %v175_v4 = vld [vmem:[%s742_s30 + $0x20] sm:$0xf] }
  0x17   : > { %170 = vst [vmem:[%s143_s3 + $0x4] sm:$0xf] %v169_v1  ;;  %v177_v5 = vld [vmem:[%s742_s30 + $0x28] sm:$0xf]  ;;  %v179_v6 = vld [vmem:[%s742_s30 + $0x30] sm:$0xf] }
  0x18   : > { %172 = vst [vmem:[%s143_s3 + $0x8] sm:$0xf] %v171_v2  ;;  %v181_v7 = vld [vmem:[%s742_s30 + $0x38] sm:$0xf]  ;;  %v183_v8 = vld [vmem:[%s742_s30 + $0x40] sm:$0xf] }
  0x19   : > { %174 = vst [vmem:[%s143_s3 + $0xc] sm:$0xf] %v173_v3  ;;  %v185_v9 = vld [vmem:[%s742_s30 + $0x48] sm:$0xf]  ;;  %v187_v10 = vld [vmem:[%s742_s30 + $0x50] sm:$0xf] }
  0x1a   : > { %176 = vst [vmem:[%s143_s3 + $0x10] sm:$0xf] %v175_v4  ;;  %v189_v11 = vld [vmem:[%s742_s30 + $0x58] sm:$0xf]  ;;  %v191_v12 = vld [vmem:[%s742_s30 + $0x60] sm:$0xf] }
  0x1b   : > { %178 = vst [vmem:[%s143_s3 + $0x14] sm:$0xf] %v177_v5  ;;  %v193_v13 = vld [vmem:[%s742_s30 + $0x68] sm:$0xf]  ;;  %v195_v14 = vld [vmem:[%s742_s30 + $0x70] sm:$0xf] }
  0x1c   : > { %180 = vst [vmem:[%s143_s3 + $0x18] sm:$0xf] %v179_v6  ;;  %v197_v15 = vld [vmem:[%s742_s30 + $0x78] sm:$0xf] }
  0x1d   : > { %182 = vst [vmem:[%s143_s3 + $0x1c] sm:$0xf] %v181_v7 }
  0x1e   : > { %184 = vst [vmem:[%s143_s3 + $0x20] sm:$0xf] %v183_v8 }
  0x1f   : > { %186 = vst [vmem:[%s143_s3 + $0x24] sm:$0xf] %v185_v9 }
  0x20   : > { %188 = vst [vmem:[%s143_s3 + $0x28] sm:$0xf] %v187_v10 }
  0x21   : > { %190 = vst [vmem:[%s143_s3 + $0x2c] sm:$0xf] %v189_v11 }
  0x22   : > { %192 = vst [vmem:[%s143_s3 + $0x30] sm:$0xf] %v191_v12 }
  0x23   : > { %194 = vst [vmem:[%s143_s3 + $0x34] sm:$0xf] %v193_v13 }
  0x24   : > { %196 = vst [vmem:[%s143_s3 + $0x38] sm:$0xf] %v195_v14 }
  0x25   : > { %198 = vst [vmem:[%s143_s3 + $0x3c] sm:$0xf] %v197_v15 }
  0x26 PF: > { %p506_p7 = scmp.ge.s32.totalorder %s664_s15, 1  ;;  %p253_p8 = scmp.lt.s32.totalorder %s664_s15, 5 }
  0x28   : > { %p254_p9 = pnand %p506_p7, %p253_p8 }
  0x29   : > { %s260_s4 = sand.u32 (!%p254_p9), 1, %s640_s9   ;;  %p288_p10 = scmp.lt.s32.totalorder (!%p254_p9), %s652_s12, 1 }
  0x2a   : > { %257 = sbr.rel (%p254_p9) target bundleno = 213 (0xd5), region = 65  ;;  %s507_s5 = sshll.u32 (!%p254_p9), %s260_s4, 6 }
  0x2b   : > { %p295_p11 = scmp.lt.s32.totalorder (!%p254_p9), %s648_s11, 1  ;;  %s262_s6 = scalar_lea.vmem (!%p254_p9), [#allocation2], %s507_s5 }
  0x2f   : > { %v552_v16 = vld [vmem:[%s262_s6 + $0x38] sm:$0xff]  ;;  %s810_s12 = smov (!%p288_p10, %s652_s12), 1  ;;  %s812_s11 = smov (!%p295_p11, %s648_s11), 1  ;;  %v551_v17 = vld [vmem:[%s262_s6 + $0x30] sm:$0xff]  ;;  %v550_v18 = vld [vmem:[%s262_s6 + $0x28] sm:$0xff]  ;;  %v666_v19 = vmov 0.0  }
  0x30   : > { %377 = vmatpush.bf16.msra.mxu0 %v552_v16  ;;  %s508_s7 = sshll.u32 %s810_s12, 1  ;;  %v549_v20 = vld [vmem:[%s262_s6 + $0x20] sm:$0xff]  ;;  %v548_v21 = vld [vmem:[%s262_s6 + $0x18] sm:$0xff]  ;;  %v547_v22 = vld [vmem:[%s262_s6 + $0x10] sm:$0xff] }
  0x31   : > { %s298_s8 = sadd.s32 %s508_s7, %s812_s11  ;;  %v546_v23 = vld [vmem:[%s262_s6 + $0x8] sm:$0xff]  ;;  %v545_v24 = vld [vmem:[%s262_s6] sm:$0xff]  ;;  %s291_s12 = scalar_lea.vmem %s794_s0, %s508_s7 }
  0x32   : > { %s510_s18 = sshll.u32 %s298_s8, 2  ;;  %v311_v25 = vld [vmem:[%s291_s12] sm:$0x3] }
  0x33   : > { %s300_s21 = scalar_lea.vmem %s796_s2, %s510_s18 }
  0x34   : > { %378 = vmatpush.bf16.msra.mxu0 %v551_v17  ;;  %305 = vst [vmem:[%s300_s21] sm:$0xf] %v666_v19 }
  0x38   : > { %379 = vmatpush.bf16.msra.mxu0 %v550_v18 }
  0x3b   : > { %v312_v26 = vld [vmem:[%s300_s21] sm:$0xf] }
  0x3c   : > { %380 = vmatpush.bf16.msra.mxu0 %v549_v20 }
  0x40   : > { %381 = vmatpush.bf16.msra.mxu0 %v548_v21 }
  0x44   : > { %382 = vmatpush.bf16.msra.mxu0 %v547_v22 }
  0x48   : > { %383 = vmatpush.bf16.msra.mxu0 %v546_v23 }
  0x4c   : > { %384 = vmatpush.bf16.msra.mxu0 %v545_v24 }
  0x4f   : > { %385 = vmatmul.bf16.vlgmr.msra.gmra.mxu0 %v311_v25 }
  0xcc   : > { %v386_v27 = vpop.f32.mrf.mxu0 }
  0xcd   : > { %v390_v28 = vadd.f32 %v386_v27, %v312_v26 }
  0xcf   : > { %391 = vst [vmem:[%s300_s21] sm:$0xf] %v390_v28 }
  0xd4   : > { %v388_v29 = vpop.f32.mrf.mxu0 }
  0xd5 PF: > { %s12_s15 = sadd.s32 1, %s664_s15   ;;  %s797_s9 = smov %s644_s10 }
  0xd6   : > { %p9_p12 = scmp.ge.s32.totalorder %s12_s15, 6   ;;  %s798_s10 = smov %s733_s22 }
  0xd7   : > { %s799_s11 = smov %s656_s13  ;;  %s800_s12 = smov %s660_s14 }
  0xd8   : > { %s801_s13 = smov %s804_s16  ;;  %s802_s14 = smov %s808_s17 }
  0xd9   :  { %11 = sbr.rel (!%p9_p12) target bundleno = 4 (0x4), region = 112 }

// kernel: spectral_conv2d_dse_forward.5
= control target key start
LH: loop header
LB: loop body
LE: loop exit
PB: predicated region body
PF: predicated region fallthrough
CT: control target
= control target key end

     0   :  { %7 = vsyncpa [#allocation3], 0  ;;  %s791_s0 = inlined_call_operand.vmem [shape: bf16[2,4,256], index: 0, kind: input, shape index: {}]   ;;  %s792_s1 = inlined_call_operand.vmem [shape: bf16[2,256,128], index: 1, kind: input, shape index: {}]   ;;  %s793_s2 = inlined_call_operand.hbm [shape: f32[2,4,128], index: 2, kind: output, shape index: {}]  }
   0x1   :  { %9 = vsyncpa [#allocation3 + $0x1], 0  ;;  %s658_s9 = smov 0   ;;  %s660_s10 = smov 0  }
   0x2   :  { %s662_s11 = smov 0   ;;  %s664_s12 = smov 0  }
   0x3   :  { %s666_s13 = smov 0   ;;  %s668_s14 = smov 0  }
   0x4   :  { %s670_s15 = smov 0   ;;  %s672_s16 = smov 0  }
   0x5 LB: > { %s415_s17 = sadd.s32 4294967295, %s640_s16   ;;  %s416_s18 = sadd.s32 4294967294, %s640_s16   ;;  %s640_s16 = sphi %s672_s16, %s15_s16   ;;  %s636_s15 = sphi %s670_s15, %s802_s15   ;;  %s632_s14 = sphi %s668_s14, %s801_s14   ;;  %s628_s13 = sphi %s666_s13, %s800_s13   ;;  %s624_s12 = sphi %s664_s12, %s799_s12   ;;  %s620_s11 = sphi %s662_s11, %s798_s11   ;;  %s616_s10 = sphi %s660_s10, %s797_s10   ;;  %s612_s9 = sphi %s658_s9, %s796_s9  }
   0x6   : > { %s27_s19 = sadd.s32 1, %s632_s14  ;;  %s34_s20 = sadd.s32 1, %s636_s15 }
   0x7   : > { %p28_p0 = scmp.ge.s32.totalorder %s27_s19, 2  ;;  %p109_p1 = scmp.ne.s32.totalorder %s620_s11, %s616_s10 }
   0x8   : > { %p110_p2 = scmp.eq.s32.totalorder %s415_s17, 3  ;;  %p115_p4 = scmp.ne.s32.totalorder %s616_s10, %s612_s9 }
   0x9   : > { %s804_s19 = smov (%p28_p0, %s27_s19), 0  ;;  %s806_s20 = smov (!%p28_p0, %s34_s20), %s636_s15 }
   0xa   : > { %p707_p3 = por %p110_p2, %p109_p1  ;;  %p36_p5 = scmp.ge.s32.totalorder %s806_s20, 2 }
   0xb   : > { %p116_p6 = scmp.eq.s32.totalorder %s416_s18, 3  ;;  %p419_p7 = scmp.ge.s32.totalorder %s640_s16, 1 }
   0xc   : > { %p158_p8 = scmp.lt.s32.totalorder %s640_s16, 5  ;;  %s808_s20 = smov (%p36_p5, %s806_s20), 0 }
   0xd   : > { %p717_p9 = por %p116_p6, %p115_p4  ;;  %s94_s23 = ssub.s32 %s636_s15, %s808_s20 }
   0xe   : > { %p159_p10 = pnand %p419_p7, %p158_p8  ;;  %s99_s24 = sadd.s32 1, %s620_s11 }
   0xf   : > { %p97_p11 = scmp.eq.s32.totalorder %s94_s23, 0  ;;  %s189_s26 = sand.u32 (!%p159_p10), 1, %s616_s10  }
  0x10   : > { %162 = sbr.rel (%p159_p10) target bundleno = 195 (0xc3), region = 28  ;;  %p192_p12 = scmp.lt.s32.totalorder (!%p159_p10), %s628_s13, 1 }
  0x11   : > { %s725_s25 = scalar_select %p97_p11, %s620_s11, %s99_s24  }
  0x12   : > { %s420_s27 = sshll.u32 (!%p159_p10), %s189_s26, 2  ;;  %s423_s28 = sshll.u32 (!%p159_p10), %s624_s12, 4 }
  0x13   : > { %p200_p13 = scmp.lt.s32.totalorder (!%p159_p10), %s423_s28, 31  ;;  %s739_s24 = scalar_lea.vmem (!%p159_p10), [#allocation2], %s420_s27 }
  0x14   : > { %p426_p0 = scmp.ne.s32.totalorder (!%p159_p10), %s624_s12, 0 }
  0x15   : > { %s193_s29 = scalar_select %p192_p12, %s628_s13, 1 }
  0x16   : > { %s810_s28 = smov (!%p200_p13, %s423_s28), 31  ;;  %213 = sbr.rel (%p426_p0) target bundleno = 29 (0x1d), region = 32 }
  0x17   : > { %s465_s30 = sshll.u32 %s193_s29, 2  ;;  %s424_s3 = sshll.u32 %s193_s29, 5 }
  0x18   : > { %s196_s6 = scalar_lea.vmem %s791_s0, %s465_s30  ;;  %s206_s7 = sadd.s32 %s424_s3, %s810_s28 }
  0x19   : > { %s425_s8 = sshll.u32 %s206_s7, 2 }
  0x1a   : > { %s208_s23 = scalar_lea.vmem %s792_s1, %s425_s8 }
  0x1b   : > { %v642_v0 = vmov 0.0  }
  0x1c   : > { %214 = vst [vmem:[%s739_s24] sm:$0xf] %v642_v0 }
  0x1d PF: > { %v473_v1 = vld [vmem:[%s208_s23 + $0x38] sm:$0xff]  ;;  %v472_v2 = vld [vmem:[%s208_s23 + $0x30] sm:$0xff]  ;;  %v471_v3 = vld [vmem:[%s208_s23 + $0x28] sm:$0xff]  ;;  %s427_s27 = sshll.u32 %s624_s12, 7  ;;  %s462_s3 = sshll.u32 %s628_s13, 2 }
  0x1e   : > { %286 = vmatpush.bf16.msra.mxu0 %v473_v1  ;;  %v470_v4 = vld [vmem:[%s208_s23 + $0x20] sm:$0xff]  ;;  %v469_v5 = vld [vmem:[%s208_s23 + $0x18] sm:$0xff]  ;;  %v468_v6 = vld [vmem:[%s208_s23 + $0x10] sm:$0xff]  ;;  %s216_s28 = sshra.s32 %s427_s27, 7  ;;  %s313_s7 = scalar_lea.hbm %s793_s2, %s462_s3 }
  0x1f   : > { %v467_v7 = vld [vmem:[%s208_s23 + $0x8] sm:$0xff]  ;;  %s428_s29 = sshll.u32 %s216_s28, 1  ;;  %v466_v8 = vld [vmem:[%s208_s23] sm:$0xff]  ;;  %s315_s12 = sshll.u32 %s739_s24, 4  ;;  %s316_s12 = int_to_ptr.vmem [resolvable:$true] %s315_s12 }
  0x20   : > { %s219_s30 = scalar_lea.vmem %s196_s6, %s428_s29  ;;  %s317_s8 = sshll.u32 %s313_s7, 4  ;;  %s318_s8 = int_to_ptr.hbm [resolvable:$true] %s317_s8 }
  0x21   : > { %v220_v9 = vld [vmem:[%s219_s30] sm:$0x3]  ;;  %s302_s17 = scalar_lea.sflag [#allocation3], %s189_s26  ;;  %s560_s6 = sshra.s32 %s318_s8, 4  ;;  %s561_s6 = int_to_ptr.hbm [resolvable:$true] %s560_s6 }
  0x22   : > { %287 = vmatpush.bf16.msra.mxu0 %v472_v2  ;;  %s562_s18 = scalar_lea.hbm %s561_s6, 4  ;;  %s566_s27 = scalar_lea.hbm %s793_s2, 8 }
  0x23   : > { %v221_v10 = vld [vmem:[%s739_s24] sm:$0xf]  ;;  %p563_p1 = scmp.ne.s32.totalorder %s561_s6, %s562_s18  ;;  %p567_p5 = scmp.lt.s32.totalorder %s561_s6, %s793_s2 }
  0x24   : > { %p568_p6 = scmp.lt.s32.totalorder %s566_s27, %s562_s18 }
  0x25   : > { %p564_p2 = pnand %p563_p1, %p707_p3 }
  0x26   : > { %288 = vmatpush.bf16.msra.mxu0 %v471_v3  ;;  %p569_p7 = por %p568_p6, %p567_p5 }
  0x27   : > { %p565_p4 = pneg %p564_p2 }
  0x29   : > { %p570_p8 = pnand %p569_p7, %p565_p4 }
  0x2a   : > { %289 = vmatpush.bf16.msra.mxu0 %v470_v4 }
  0x2e   : > { %290 = vmatpush.bf16.msra.mxu0 %v469_v5 }
  0x32   : > { %291 = vmatpush.bf16.msra.mxu0 %v468_v6 }
  0x36   : > { %292 = vmatpush.bf16.msra.mxu0 %v467_v7 }
  0x3a   : > { %293 = vmatpush.bf16.msra.mxu0 %v466_v8 }
  0x3d   : > { %294 = vmatmul.bf16.vlgmr.msra.gmra.mxu0 %v220_v9 }
  0xba   : > { %v295_v11 = vpop.f32.mrf.mxu0 }
  0xbb   : > { %v299_v12 = vadd.f32 %v295_v11, %v221_v10 }
  0xbd   : > { %300 = vst [vmem:[%s739_s24] sm:$0xf] %v299_v12 }
  0xbe   : > { %573 = shalt.err (!%p570_p8)
}
  0xbf   : > { %474 = dma.vmem_to_hbm [thread:$0]  (%p707_p3), %s316_s12, 64, %s318_s8, %s302_s17  }
  0xc2   : > { %v297_v13 = vpop.f32.mrf.mxu0 }
  0xc3 PF: > { %p480_p10 = scmp.ge.s32.totalorder %s640_s16, 2  ;;  %s329_s26 = sand.u32 1, %s612_s9  }
  0xc4   : > { %s330_s24 = scalar_lea.sflag [#allocation3], %s329_s26 }
  0xc5   : > { %p477_p11 = pnand %p480_p10, %p717_p9 }
  0xc7   : > { %p478_p12 = pneg %p477_p11 }
  0xc9   : > { %607 = dma.done.wait (%p478_p12), %s330_s24, 64  }
  0xca   : > { %609 = vsyncadd (%p478_p12), %s330_s24, 4294967232  ;;  %s15_s16 = sadd.s32 1, %s640_s16   ;;  %s796_s9 = smov %s616_s10 }
  0xcb   : > { %p12_p13 = scmp.ge.s32.totalorder %s15_s16, 6   ;;  %s797_s10 = smov %s620_s11 }
  0xcc   : > { %s798_s11 = smov %s725_s25  ;;  %s799_s12 = smov %s632_s14 }
  0xcd   : > { %s800_s13 = smov %s636_s15  ;;  %s801_s14 = smov %s804_s19 }
  0xce   : > { %s802_s15 = smov %s808_s20  ;;  %14 = sbr.rel (!%p12_p13) target bundleno = 5 (0x5), region = 71 }
  0xd3   :  { %336 = vsyncpa [#allocation3], 1 }
  0xd4   :  { %338 = vsyncpa [#allocation3 + $0x1], 1 }

</bundles_post_ra>
